<compile_context>
chip_gen: v7x
topology: tpu7x:2x2x1
jax: 0.10.0
libtpu: 0.0.40
codegen_flags: <defaults>
</compile_context>

<pallas_src>
import functools

import jax
import jax.numpy as jnp
from jax.experimental import pallas as pl
from jax.experimental.pallas import tpu as pltpu


# ----------------------------------------------------------------------------
# Kernels: fused  y = L2?( L2?(x @ W1 + b1) @ W2 + b2 )
# Two variants: single-K-tile (no scratch) and K-tiled (resident f32 acc).
# ----------------------------------------------------------------------------
def _l2norm(y):
    # x / x.norm(dim=-1, keepdim=True); rsqrt goes to the EUP slot.
    # (tiny eps avoids NaN on an all-zero padded row; negligible otherwise)
    return y * jax.lax.rsqrt(jnp.sum(y * y, axis=-1, keepdims=True) + 1e-12)


def _fused2_single_kernel(x_ref, w1_ref, b1_ref, w2_ref, b2_ref, o_ref,
                          *, normalize_mid, normalize_out):
    h = jnp.dot(x_ref[...], w1_ref[...],
                preferred_element_type=jnp.float32) + b1_ref[...]
    if normalize_mid:
        h = _l2norm(h)
    y = jnp.dot(h.astype(w2_ref.dtype), w2_ref[...],
                preferred_element_type=jnp.float32) + b2_ref[...]
    if normalize_out:
        y = _l2norm(y)
    o_ref[...] = y.astype(o_ref.dtype)


def _fused2_acc_kernel(x_ref, w1_ref, b1_ref, w2_ref, b2_ref, o_ref, acc_ref,
                       *, normalize_mid, normalize_out):
    k = pl.program_id(0)

    @pl.when(k == 0)
    def _():
        acc_ref[...] = jnp.zeros_like(acc_ref)

    acc_ref[...] += jnp.dot(x_ref[...], w1_ref[...],
                            preferred_element_type=jnp.float32)

    @pl.when(k == pl.num_programs(0) - 1)
    def _():
        h = acc_ref[...] + b1_ref[...]
        if normalize_mid:
            h = _l2norm(h)
        y = jnp.dot(h.astype(w2_ref.dtype), w2_ref[...],
                    preferred_element_type=jnp.float32) + b2_ref[...]
        if normalize_out:
            y = _l2norm(y)
        o_ref[...] = y.astype(o_ref.dtype)


def _pick_tk(k, n, itemsize, budget_bytes=8 * 1024 * 1024):
    """Largest multiple-of-128 divisor of K whose (tk, N) weight block fits the
    single-buffer budget (the pipeline double-buffers it)."""
    if k * n * itemsize <= budget_bytes:
        return k
    for t in range(k - 128, 0, -128):
        if k % t == 0 and t * n * itemsize <= budget_bytes:
            return t
    raise ValueError(f"no K tile found for K={k}, N={n}")


def pallas_linear2(x, w1, b1, w2, b2, *, normalize_mid, normalize_out=True):
    """Fused  x @ W1 + b1  ->  (optional L2)  ->  @ W2 + b2  ->  (optional L2).

    x: (M, K) any float dtype; w1: (K, N1) bf16/f32; w2: (N1, N2) bf16/f32;
    biases f32.  Returns (M, N2) f32.  Accumulation is always f32.
    """
    M, K = x.shape
    K2, N1 = w1.shape
    N1b, N2 = w2.shape
    assert K == K2 and N1 == N1b and b1.shape == (N1,) and b2.shape == (N2,)

    # Activations in the weight dtype (bf16 path keeps f32 MXU accumulation).
    x = x.astype(w1.dtype)

    # Pad rows: bf16 packs 2 rows per sublane -> multiple of 16 for unmasked,
    # fully-packed loads; f32 only needs 8.
    pad = 16 if w1.dtype == jnp.bfloat16 else 8
    Mp = ((M + pad - 1) // pad) * pad
    if Mp != M:
        x = jnp.pad(x, ((0, Mp - M), (0, 0)))

    tk = _pick_tk(K, N1, jnp.dtype(w1.dtype).itemsize)
    assert K % tk == 0
    k_tiles = K // tk

    b1r = b1.reshape(1, N1).astype(jnp.float32)
    b2r = b2.reshape(1, N2).astype(jnp.float32)

    in_specs = [
        pl.BlockSpec((Mp, tk), lambda k: (0, k)),    # activations
        pl.BlockSpec((tk, N1), lambda k: (k, 0)),    # W1 (K-streamed)
        pl.BlockSpec((1, N1), lambda k: (0, 0)),     # b1
        pl.BlockSpec((N1, N2), lambda k: (0, 0)),    # W2 (resident in VMEM)
        pl.BlockSpec((1, N2), lambda k: (0, 0)),     # b2
    ]
    out_spec = pl.BlockSpec((Mp, N2), lambda k: (0, 0))

    if k_tiles == 1:
        # Single K tile: no accumulator scratch, write straight to o_ref.
        kernel = functools.partial(_fused2_single_kernel,
                                   normalize_mid=normalize_mid,
                                   normalize_out=normalize_out)
        scratch = []
    else:
        kernel = functools.partial(_fused2_acc_kernel,
                                   normalize_mid=normalize_mid,
                                   normalize_out=normalize_out)
        scratch = [pltpu.VMEM((Mp, N1), jnp.float32)]

    out = pl.pallas_call(
        kernel,
        out_shape=jax.ShapeDtypeStruct((Mp, N2), jnp.float32),
        grid_spec=pltpu.PrefetchScalarGridSpec(
            num_scalar_prefetch=0,
            grid=(k_tiles,),
            in_specs=in_specs,
            out_specs=out_spec,
            scratch_shapes=scratch,
        ),
        compiler_params=pltpu.CompilerParams(
            dimension_semantics=("arbitrary",),
            vmem_limit_bytes=32 * 1024 * 1024,
        ),
    )(x, w1, b1r, w2, b2r)

    return out[:M] if Mp != M else out


# ----------------------------------------------------------------------------
# Parameter construction (deterministic, synthetic).
# ----------------------------------------------------------------------------
def make_params(img_flat_dim, txt_embed_dim, vocab_size):
    key = jax.random.PRNGKey(0)
    ks = jax.random.split(key, 10)

    def lin(k, fan_in, fan_out):
        scale = 1.0 / jnp.sqrt(jnp.float32(fan_in))
        kw, kb = jax.random.split(k)
        w = jax.random.uniform(kw, (fan_in, fan_out), jnp.float32, -scale, scale)
        b = jax.random.uniform(kb, (fan_out,), jnp.float32, -scale, scale)
        return w, b

    p = {}
    # Synthetic frozen CLIP encoders (stand-ins for model.encode_image/text).
    w_img, p["b_img"] = lin(ks[0], img_flat_dim, 512)
    p["tok_emb"] = 0.02 * jax.random.normal(
        ks[1], (vocab_size, txt_embed_dim), jnp.float32)
    w_txt, p["b_txt"] = lin(ks[2], txt_embed_dim, 512)
    # Trainable head exactly as in the module: fc(512->512), fc1(5120->2560),
    # fc2(2560->512).  All weights bf16 (HBM-bandwidth bound layers);
    # biases and accumulation stay f32.
    w_fc, p["b_fc"] = lin(ks[3], 512, 512)
    w_fc1, p["b_fc1"] = lin(ks[4], 5120, 2560)
    w_fc2, p["b_fc2"] = lin(ks[5], 2560, 512)
    for name, w in (("w_img", w_img), ("w_txt", w_txt), ("w_fc", w_fc),
                    ("w_fc1", w_fc1), ("w_fc2", w_fc2)):
        p[name] = w.astype(jnp.bfloat16)
    return p


# ----------------------------------------------------------------------------
# Forward pass mirroring CLIPModel.forward (3 fused pallas_calls).
# ----------------------------------------------------------------------------
def clip_model_forward(params, orgImg, img_aug1, img_aug2, images,
                       tokenisedCaption, tokenisedCaption1):
    B = orgImg.shape[0]
    n_bbox = len(images)
    flat = lambda t: t.reshape(B, -1)

    # --- fused image path: encode (13 imgs) -> fc -> L2-normalize, ONE call.
    # bbox images are laid out batch-major (b, i) so the fc1 input below is a
    # plain reshape of the fc-output slab instead of a 10-way concatenate.
    bbox_flat = jnp.stack([flat(im) for im in images], axis=1)   # (B, n_bbox, CHW)
    bbox_flat = bbox_flat.reshape(B * n_bbox, -1)
    all_imgs = jnp.concatenate(
        [flat(orgImg), flat(img_aug1), flat(img_aug2), bbox_flat], axis=0)
    img_fc = pallas_linear2(all_imgs, params["w_img"], params["b_img"],
                            params["w_fc"], params["b_fc"],
                            normalize_mid=False)                 # (13B, 512)

    # --- fused text path: encode (2 captions) -> fc -> L2-normalize, ONE call.
    toks = jnp.concatenate([tokenisedCaption, tokenisedCaption1], axis=0)
    emb = jnp.take(params["tok_emb"], toks, axis=0)              # (2B, S, D) glue
    pooled = jnp.mean(emb, axis=1)                               # (2B, D)
    txt_fc = pallas_linear2(pooled, params["w_txt"], params["b_txt"],
                            params["w_fc"], params["b_fc"],
                            normalize_mid=False)                 # (2B, 512)

    encoded_orgImg = img_fc[0 * B:1 * B]
    encoded_img_aug1 = img_fc[1 * B:2 * B]
    encoded_img_aug2 = img_fc[2 * B:3 * B]
    bbox_block = img_fc[3 * B:(3 + n_bbox) * B].reshape(B, n_bbox, 512)
    bbox_encoded = [bbox_block[:, i, :] for i in range(n_bbox)]
    encoded_text = txt_fc[0:B]
    encoded_text1 = txt_fc[B:2 * B]

    feature_list = [encoded_orgImg, encoded_img_aug1, encoded_img_aug2]
    feature_list_img = [encoded_orgImg, encoded_img_aug1, encoded_img_aug2]
    bbox_list1 = list(bbox_encoded) + [encoded_orgImg]

    # --- fused fc1 -> L2 -> fc2 -> L2, ONE call (w_fc2 resident in VMEM).
    # TODO(synk): the reference calls fc1 on a Python list of tensors; feature-
    #             axis concatenation in list order is the assumed semantics.
    bbox_cat = bbox_block.reshape(B, n_bbox * 512)               # (B, 5120) reshape
    bbox_feat = pallas_linear2(bbox_cat, params["w_fc1"], params["b_fc1"],
                               params["w_fc2"], params["b_fc2"],
                               normalize_mid=True)               # (B, 512)
    feature_list.append(bbox_feat)
    feature_list_img.append(bbox_feat)

    feature_list_aug_text = [encoded_text1, encoded_text1,
                             encoded_text1, encoded_text1]

    feature_list.append(encoded_text)
    bbox_list1.append(encoded_text)
    bbox_list1.append(encoded_text1)

    return feature_list, bbox_list1, feature_list_img, feature_list_aug_text


# ----------------------------------------------------------------------------
if __name__ == "__main__":
    B, C, H, W = 2, 3, 16, 16
    SEQ, VOCAB, TXT_D = 8, 64, 128
    NUM_BBOX = 10  # 10 * 512 = 5120 = fc1 input dim

    params = make_params(C * H * W, TXT_D, VOCAB)

    key = jax.random.PRNGKey(0)
    k = jax.random.split(key, 6)
    orgImg = jax.random.normal(k[0], (B, C, H, W), jnp.float32)
    img_aug1 = jax.random.normal(k[1], (B, C, H, W), jnp.float32)
    img_aug2 = jax.random.normal(k[2], (B, C, H, W), jnp.float32)
    images = [
        jax.random.normal(jax.random.fold_in(k[3], i), (B, C, H, W), jnp.float32)
        for i in range(NUM_BBOX)
    ]
    tokenisedCaption = jax.random.randint(k[4], (B, SEQ), 0, VOCAB, jnp.int32)
    tokenisedCaption1 = jax.random.randint(k[5], (B, SEQ), 0, VOCAB, jnp.int32)

    out = clip_model_forward(
        params, orgImg, img_aug1, img_aug2, images,
        tokenisedCaption, tokenisedCaption1,
    )
    out = jax.block_until_ready(out)

    feature_list, bbox_list1, feature_list_img, feature_list_aug_text = out
    assert len(feature_list) == 5 and all(f.shape == (B, 512) for f in feature_list)
    assert len(bbox_list1) == NUM_BBOX + 3
    assert len(feature_list_img) == 4
    assert len(feature_list_aug_text) == 4
    assert all(bool(jnp.all(jnp.isfinite(f))) for f in feature_list)
    # L2-normalized rows should have unit norm.
    assert all(
        bool(jnp.allclose(jnp.linalg.norm(f, axis=-1), 1.0, atol=1e-3))
        for f in feature_list
    )
    print("KERNEL_OK")
</pallas_src>

<mosaic_0001>
module attributes {stable_mosaic.version = 11 : i64} {
  func.func @_fused2_single_kernel(%arg0: i32, %arg1: memref<32x768xbf16, #tpu.memory_space<vmem>>, %arg2: memref<768x512xbf16, #tpu.memory_space<vmem>>, %arg3: memref<1x512xf32, #tpu.memory_space<vmem>>, %arg4: memref<512x512xbf16, #tpu.memory_space<vmem>>, %arg5: memref<1x512xf32, #tpu.memory_space<vmem>>, %arg6: memref<32x512xf32, #tpu.memory_space<vmem>>) attributes {dimension_semantics = [#tpu.dimension_semantics<arbitrary>], iteration_bounds = array<i64: 1>, scalar_prefetch = 0 : i64, scratch_operands = 0 : i64, tpu.core_type = #tpu.core_type<tc>, window_params = [{transform_indices = @transform_0, window_bounds = array<i64: 32, 768>}, {transform_indices = @transform_1, window_bounds = array<i64: 768, 512>}, {pipeline_mode = #tpu.pipeline_mode<synchronous>, transform_indices = @transform_2, window_bounds = array<i64: 1, 512>}, {pipeline_mode = #tpu.pipeline_mode<synchronous>, transform_indices = @transform_3, window_bounds = array<i64: 512, 512>}, {pipeline_mode = #tpu.pipeline_mode<synchronous>, transform_indices = @transform_4, window_bounds = array<i64: 1, 512>}, {pipeline_mode = #tpu.pipeline_mode<synchronous>, transform_indices = @transform_5, window_bounds = array<i64: 32, 512>}]} {
    %c0 = arith.constant 0 : index
    %c0_0 = arith.constant 0 : index
    %0 = vector.load %arg1[%c0, %c0_0] : memref<32x768xbf16, #tpu.memory_space<vmem>>, vector<32x768xbf16>
    %c0_1 = arith.constant 0 : index
    %c0_2 = arith.constant 0 : index
    %1 = vector.load %arg2[%c0_1, %c0_2] : memref<768x512xbf16, #tpu.memory_space<vmem>>, vector<768x512xbf16>
    %cst = arith.constant dense<0.000000e+00> : vector<32x512xf32>
    %2 = tpu.matmul %0, %1, %cst {dimension_numbers = #tpu.dot_dimension_numbers<[1], [0], [0], [1], [0, 0, 1, 1], [], []>} : vector<32x768xbf16>, vector<768x512xbf16>, vector<32x512xf32> -> vector<32x512xf32>
    %c0_3 = arith.constant 0 : index
    %c0_4 = arith.constant 0 : index
    %3 = vector.load %arg3[%c0_3, %c0_4] : memref<1x512xf32, #tpu.memory_space<vmem>>, vector<1x512xf32>
    %4 = vector.broadcast %3 : vector<1x512xf32> to vector<32x512xf32>
    %5 = arith.addf %2, %4 : vector<32x512xf32>
    %6 = arith.truncf %5 : vector<32x512xf32> to vector<32x512xbf16>
    %c0_5 = arith.constant 0 : index
    %c0_6 = arith.constant 0 : index
    %7 = vector.load %arg4[%c0_5, %c0_6] : memref<512x512xbf16, #tpu.memory_space<vmem>>, vector<512x512xbf16>
    %cst_7 = arith.constant dense<0.000000e+00> : vector<32x512xf32>
    %8 = tpu.matmul %6, %7, %cst_7 {dimension_numbers = #tpu.dot_dimension_numbers<[1], [0], [0], [1], [0, 0, 1, 1], [], []>} : vector<32x512xbf16>, vector<512x512xbf16>, vector<32x512xf32> -> vector<32x512xf32>
    %c0_8 = arith.constant 0 : index
    %c0_9 = arith.constant 0 : index
    %9 = vector.load %arg5[%c0_8, %c0_9] : memref<1x512xf32, #tpu.memory_space<vmem>>, vector<1x512xf32>
    %10 = vector.broadcast %9 : vector<1x512xf32> to vector<32x512xf32>
    %11 = arith.addf %8, %10 : vector<32x512xf32>
    %12 = arith.mulf %11, %11 : vector<32x512xf32>
    %cst_10 = arith.constant dense<0.000000e+00> : vector<32xf32>
    %13 = vector.multi_reduction <add>, %12, %cst_10 [1] : vector<32x512xf32> to vector<32xf32>
    %14 = vector.shape_cast %13 : vector<32xf32> to vector<32x1xf32>
    %cst_11 = arith.constant 9.99999996E-13 : f32
    %15 = vector.broadcast %cst_11 : f32 to vector<32x1xf32>
    %16 = arith.addf %14, %15 : vector<32x1xf32>
    %17 = math.rsqrt %16 : vector<32x1xf32>
    %18 = vector.broadcast %17 : vector<32x1xf32> to vector<32x512xf32>
    %19 = arith.mulf %11, %18 : vector<32x512xf32>
    %c0_12 = arith.constant 0 : index
    %c0_13 = arith.constant 0 : index
    %20 = vector.load %arg6[%c0_12, %c0_13] : memref<32x512xf32, #tpu.memory_space<vmem>>, vector<32x512xf32>
    tpu.vector_store %arg6[%c0_12, %c0_13], %19 {strides = array<i32>} : memref<32x512xf32, #tpu.memory_space<vmem>>, vector<32x512xf32>,
    return
  }
  func.func @transform_0(%arg0: i32) -> (i32, i32) {
    %c0_i32 = arith.constant 0 : i32
    %c0_i32_0 = arith.constant 0 : i32
    return %c0_i32, %arg0 : i32, i32
  }
  func.func @transform_1(%arg0: i32) -> (i32, i32) {
    %c0_i32 = arith.constant 0 : i32
    %c0_i32_0 = arith.constant 0 : i32
    return %arg0, %c0_i32 : i32, i32
  }
  func.func @transform_2(%arg0: i32) -> (i32, i32) {
    %c0_i32 = arith.constant 0 : i32
    %c0_i32_0 = arith.constant 0 : i32
    %c0_i32_1 = arith.constant 0 : i32
    return %c0_i32, %c0_i32_0 : i32, i32
  }
  func.func @transform_3(%arg0: i32) -> (i32, i32) {
    %c0_i32 = arith.constant 0 : i32
    %c0_i32_0 = arith.constant 0 : i32
    %c0_i32_1 = arith.constant 0 : i32
    return %c0_i32, %c0_i32_0 : i32, i32
  }
  func.func @transform_4(%arg0: i32) -> (i32, i32) {
    %c0_i32 = arith.constant 0 : i32
    %c0_i32_0 = arith.constant 0 : i32
    %c0_i32_1 = arith.constant 0 : i32
    return %c0_i32, %c0_i32_0 : i32, i32
  }
  func.func @transform_5(%arg0: i32) -> (i32, i32) {
    %c0_i32 = arith.constant 0 : i32
    %c0_i32_0 = arith.constant 0 : i32
    %c0_i32_1 = arith.constant 0 : i32
    return %c0_i32, %c0_i32_0 : i32, i32
  }
}

</mosaic_0001>

<bundles_post_ra>
// kernel: tpu_custom_call.1
= control target key start
LH: loop header
LB: loop body
LE: loop exit
PB: predicated region body
PF: predicated region fallthrough
CT: control target
= control target key end

     0   :  { %10 = vsyncpa [#allocation3], 0  ;;  %s3951_s0 = inlined_call_operand.hbm [shape: bf16[32,768], index: 0, kind: input, shape index: {}]   ;;  %s3952_s1 = inlined_call_operand.hbm [shape: bf16[768,512], index: 1, kind: input, shape index: {}]   ;;  %s3953_s2 = inlined_call_operand.vmem [shape: f32[1,512], index: 2, kind: input, shape index: {}]   ;;  %s3954_s3 = inlined_call_operand.hbm [shape: bf16[512,512], index: 3, kind: input, shape index: {}]   ;;  %s3955_s4 = inlined_call_operand.vmem [shape: f32[1,512], index: 4, kind: input, shape index: {}]   ;;  %s3956_s5 = inlined_call_operand.hbm [shape: f32[32,512], index: 5, kind: output, shape index: {}]  }
   0x1   :  { %11 = vsyncpa [#allocation6], 0 }
   0x2   :  { %12 = vsyncpa [#allocation4], 0  ;;  %s3752_s18 = smov [#allocation5]   ;;  %s3658_s22 = scalar_lea.hbm %s3952_s1, 24576 }
   0x3   :  { %s30_s19 = sshll.u32 %s3752_s18, 4  ;;  %p3659_p0 = scmp.ne.s32.totalorder %s3952_s1, %s3658_s22  ;;  %s31_s19 = int_to_ptr.vmem [resolvable:$true] %s30_s19 }
   0x4   :  { %p3662_p1 = scmp.lt.u32.totalorder %s3658_s22, %s3952_s1 }
   0x6   :  { %p3664_p2 = pnand %p3662_p1, %p3659_p0 }
   0x8   :  { %3667 = shalt.err (!%p3664_p2)
}
   0x9   :  { %s3668_s27 = scalar_lea.vmem %s31_s19, 24576  ;;  %p3673_p4 = scmp.lt.s32.totalorder %s31_s19, %s31_s19 }
   0xa   :  { %p3669_p3 = scmp.ne.s32.totalorder %s31_s19, %s3668_s27  ;;  %p3674_p5 = scmp.lt.s32.totalorder %s3668_s27, %s3668_s27 }
   0xc   :  { %p3675_p6 = por %p3674_p5, %p3673_p4 }
   0xe   :  { %p3676_p7 = pnand %p3675_p6, %p3669_p3 }
  0x10   :  { %3679 = shalt.err (!%p3676_p7)
}
  0x11   :  { %s3753_s28 = smov 256   ;;  %s3754_s29 = smov 16  }
  0x12   :  { %36 = dma.hbm_to_vmem [thread:$0]  %s3952_s1, 24576, %s31_s19, [#allocation6], %s3753_s28, %s3753_s28, %s3754_s29  }
  0x13   :  { %s3755_s7 = smov [#allocation2]   ;;  %s3680_s11 = scalar_lea.hbm %s3951_s0, 1536 }
  0x14   :  { %s18_s8 = sshll.u32 %s3755_s7, 4  ;;  %p3681_p8 = scmp.ne.s32.totalorder %s3951_s0, %s3680_s11  ;;  %s19_s8 = int_to_ptr.vmem [resolvable:$true] %s18_s8 }
  0x15   :  { %p3684_p9 = scmp.lt.u32.totalorder %s3680_s11, %s3951_s0 }
  0x17   :  { %p3686_p10 = pnand %p3684_p9, %p3681_p8 }
  0x19   :  { %3689 = shalt.err (!%p3686_p10)
}
  0x1a   :  { %s3690_s16 = scalar_lea.vmem %s19_s8, 1536  ;;  %p3695_p12 = scmp.lt.s32.totalorder %s19_s8, %s19_s8 }
  0x1b   :  { %p3691_p11 = scmp.ne.s32.totalorder %s19_s8, %s3690_s16  ;;  %p3696_p13 = scmp.lt.s32.totalorder %s3690_s16, %s3690_s16 }
  0x1d   :  { %p3697_p0 = por %p3696_p13, %p3695_p12 }
  0x1f   :  { %p3698_p1 = pnand %p3697_p0, %p3691_p11 }
  0x21   :  { %3701 = shalt.err (!%p3698_p1)
}
  0x22   :  { %s3756_s1 = smov 384   ;;  %s3757_s17 = smov 24  }
  0x23   :  { %24 = dma.hbm_to_vmem [thread:$0]  %s3951_s0, 1536, %s19_s8, [#allocation3], %s3756_s1, %s3756_s1, %s3757_s17  }
  0x24   :  { %s3758_s20 = smov [#allocation7]   ;;  %s3702_s24 = scalar_lea.hbm %s3954_s3, 16384 }
  0x25   :  { %s44_s21 = sshll.u32 %s3758_s20, 4  ;;  %p3703_p2 = scmp.ne.s32.totalorder %s3954_s3, %s3702_s24  ;;  %s45_s21 = int_to_ptr.vmem [resolvable:$true] %s44_s21 }
  0x26   :  { %p3706_p3 = scmp.lt.u32.totalorder %s3702_s24, %s3954_s3 }
  0x28   :  { %p3708_p4 = pnand %p3706_p3, %p3703_p2 }
  0x2a   :  { %3711 = shalt.err (!%p3708_p4)
}
  0x2b   :  { %s3712_s6 = scalar_lea.vmem %s45_s21, 16384  ;;  %p3717_p6 = scmp.lt.s32.totalorder %s45_s21, %s45_s21 }
  0x2c   :  { %p3713_p5 = scmp.ne.s32.totalorder %s45_s21, %s3712_s6  ;;  %p3718_p7 = scmp.lt.s32.totalorder %s3712_s6, %s3712_s6 }
  0x2e   :  { %p3719_p8 = por %p3718_p7, %p3717_p6 }
  0x30   :  { %p3720_p9 = pnand %p3719_p8, %p3713_p5 }
  0x32   :  { %3723 = shalt.err (!%p3720_p9)
}
  0x33   :  { %50 = dma.hbm_to_vmem [thread:$0]  %s3954_s3, 16384, %s45_s21, [#allocation6], %s3753_s28, %s3753_s28, %s3754_s29  }
  0x34   :  { %3746 = dma.done.wait [#allocation3], 1536  }
  0x35   :  { %3747 = vsyncadd [#allocation3], 4294965760 }
  0x36   :  { %3748 = dma.done.wait [#allocation6], 40960  }
  0x37   :  { %3749 = vsyncadd [#allocation6], 4294926336  ;;  %v3152_v0 = vld [vmem:[#allocation5 + $0x4] ss:$16 sps:$4 sm:$0xff]   ;;  %v3154_v1 = vld [vmem:[#allocation5 + $0xc] ss:$16 sps:$4 sm:$0xff]  }
  0x38   :  { %1308 = vmatprep.subr.bf16.mxu0 %v3152_v0  ;;  %v3156_v2 = vld [vmem:[#allocation5] ss:$16 sps:$4 sm:$0xff]   ;;  %v3157_v3 = vld [vmem:[#allocation5 + $0x8] ss:$16 sps:$4 sm:$0xff]   ;;  %1467 = vmatprep.subr.bf16.mxu1 %v3154_v1  ;;  %v3158_v4 = vld [vmem:[#allocation5 + $0x24] ss:$16 sps:$4 sm:$0xff]  }
  0x39   :  { %1309 = vmatpush1.bf16.msra.mxu0 %v3156_v2  ;;  %1468 = vmatpush1.bf16.msra.mxu1 %v3157_v3  ;;  %v3160_v5 = vld [vmem:[#allocation5 + $0x2c] ss:$16 sps:$4 sm:$0xff]   ;;  %v3162_v6 = vld [vmem:[#allocation5 + $0x20] ss:$16 sps:$4 sm:$0xff]   ;;  %v3163_v7 = vld [vmem:[#allocation5 + $0x28] ss:$16 sps:$4 sm:$0xff]  }
  0x3a   :  { %1310 = vmatprep.subr.bf16.mxu0 %v3158_v4  ;;  %1469 = vmatprep.subr.bf16.mxu1 %v3160_v5  ;;  %v3164_v8 = vld [vmem:[#allocation5 + $0x44] ss:$16 sps:$4 sm:$0xff]   ;;  %v3166_v9 = vld [vmem:[#allocation5 + $0x4c] ss:$16 sps:$4 sm:$0xff]   ;;  %v3168_v10 = vld [vmem:[#allocation5 + $0x40] ss:$16 sps:$4 sm:$0xff]  }
  0x3b   :  { %v3169_v11 = vld [vmem:[#allocation5 + $0x48] ss:$16 sps:$4 sm:$0xff]   ;;  %v3170_v12 = vld [vmem:[#allocation5 + $0x64] ss:$16 sps:$4 sm:$0xff]   ;;  %v3172_v13 = vld [vmem:[#allocation5 + $0x6c] ss:$16 sps:$4 sm:$0xff]  }
  0x3c   :  { %v3174_v14 = vld [vmem:[#allocation5 + $0x60] ss:$16 sps:$4 sm:$0xff]   ;;  %v3175_v15 = vld [vmem:[#allocation5 + $0x68] ss:$16 sps:$4 sm:$0xff]   ;;  %v3176_v16 = vld [vmem:[#allocation5 + $0x84] ss:$16 sps:$4 sm:$0xff]  }
  0x3d   :  { %1311 = vmatpush1.bf16.msra.mxu0 %v3162_v6  ;;  %1470 = vmatpush1.bf16.msra.mxu1 %v3163_v7  ;;  %v3178_v17 = vld [vmem:[#allocation5 + $0x8c] ss:$16 sps:$4 sm:$0xff]   ;;  %v3180_v18 = vld [vmem:[#allocation5 + $0x80] ss:$16 sps:$4 sm:$0xff]   ;;  %v3181_v19 = vld [vmem:[#allocation5 + $0x88] ss:$16 sps:$4 sm:$0xff]  }
  0x3e   :  { %1312 = vmatprep.subr.bf16.mxu0 %v3164_v8  ;;  %1471 = vmatprep.subr.bf16.mxu1 %v3166_v9  ;;  %v3182_v20 = vld [vmem:[#allocation5 + $0xa4] ss:$16 sps:$4 sm:$0xff]   ;;  %v3184_v21 = vld [vmem:[#allocation5 + $0xac] ss:$16 sps:$4 sm:$0xff]   ;;  %v3186_v22 = vld [vmem:[#allocation5 + $0xa0] ss:$16 sps:$4 sm:$0xff]  }
  0x3f   :  { %v3187_v23 = vld [vmem:[#allocation5 + $0xa8] ss:$16 sps:$4 sm:$0xff]   ;;  %v3188_v24 = vld [vmem:[#allocation5 + $0xc4] ss:$16 sps:$4 sm:$0xff]   ;;  %v3190_v25 = vld [vmem:[#allocation5 + $0xcc] ss:$16 sps:$4 sm:$0xff]  }
  0x40   :  { %v3192_v26 = vld [vmem:[#allocation5 + $0xc0] ss:$16 sps:$4 sm:$0xff]   ;;  %v3193_v27 = vld [vmem:[#allocation5 + $0xc8] ss:$16 sps:$4 sm:$0xff]   ;;  %v3194_v28 = vld [vmem:[#allocation5 + $0xe4] ss:$16 sps:$4 sm:$0xff]  }
  0x41   :  { %1313 = vmatpush1.bf16.msra.mxu0 %v3168_v10  ;;  %1472 = vmatpush1.bf16.msra.mxu1 %v3169_v11  ;;  %v3196_v29 = vld [vmem:[#allocation5 + $0xec] ss:$16 sps:$4 sm:$0xff]   ;;  %v3198_v30 = vld [vmem:[#allocation5 + $0xe0] ss:$16 sps:$4 sm:$0xff]   ;;  %v3199_v31 = vld [vmem:[#allocation5 + $0xe8] ss:$16 sps:$4 sm:$0xff]  }
  0x42   :  { %1314 = vmatprep.subr.bf16.mxu0 %v3170_v12  ;;  %1473 = vmatprep.subr.bf16.mxu1 %v3172_v13  ;;  %v3200_v32 = vld [vmem:[#allocation5 + $0x104] ss:$16 sps:$4 sm:$0xff]   ;;  %v3202_v33 = vld [vmem:[#allocation5 + $0x10c] ss:$16 sps:$4 sm:$0xff]   ;;  %v3204_v34 = vld [vmem:[#allocation5 + $0x100] ss:$16 sps:$4 sm:$0xff]  }
  0x43   :  { %v3205_v35 = vld [vmem:[#allocation5 + $0x108] ss:$16 sps:$4 sm:$0xff]   ;;  %v3206_v36 = vld [vmem:[#allocation5 + $0x124] ss:$16 sps:$4 sm:$0xff]   ;;  %v3208_v37 = vld [vmem:[#allocation5 + $0x12c] ss:$16 sps:$4 sm:$0xff]  }
  0x44   :  { %v3210_v38 = vld [vmem:[#allocation5 + $0x120] ss:$16 sps:$4 sm:$0xff]   ;;  %v3211_v39 = vld [vmem:[#allocation5 + $0x128] ss:$16 sps:$4 sm:$0xff]   ;;  %v3212_v40 = vld [vmem:[#allocation5 + $0x144] ss:$16 sps:$4 sm:$0xff]  }
  0x45   :  { %1315 = vmatpush1.bf16.msra.mxu0 %v3174_v14  ;;  %1474 = vmatpush1.bf16.msra.mxu1 %v3175_v15  ;;  %v3214_v41 = vld [vmem:[#allocation5 + $0x14c] ss:$16 sps:$4 sm:$0xff]   ;;  %v3216_v42 = vld [vmem:[#allocation5 + $0x140] ss:$16 sps:$4 sm:$0xff]   ;;  %v3217_v43 = vld [vmem:[#allocation5 + $0x148] ss:$16 sps:$4 sm:$0xff]  }
  0x46   :  { %1316 = vmatprep.subr.bf16.mxu0 %v3176_v16  ;;  %1475 = vmatprep.subr.bf16.mxu1 %v3178_v17  ;;  %v3218_v44 = vld [vmem:[#allocation5 + $0x164] ss:$16 sps:$4 sm:$0xff]   ;;  %v3220_v45 = vld [vmem:[#allocation5 + $0x16c] ss:$16 sps:$4 sm:$0xff]   ;;  %v3222_v46 = vld [vmem:[#allocation5 + $0x160] ss:$16 sps:$4 sm:$0xff]  }
  0x47   :  { %v3223_v47 = vld [vmem:[#allocation5 + $0x168] ss:$16 sps:$4 sm:$0xff]   ;;  %v3250_v48 = vld [vmem:[#allocation2 + $0x4] ss:$24 sps:$4 sm:$0xff]   ;;  %v3228_v51 = vld [vmem:[#allocation5 + $0x180] ss:$16 sps:$4 sm:$0xff]  }
  0x48   :  { %v3224_v49 = vld [vmem:[#allocation5 + $0x184] ss:$16 sps:$4 sm:$0xff]   ;;  %v3226_v50 = vld [vmem:[#allocation5 + $0x18c] ss:$16 sps:$4 sm:$0xff]   ;;  %1340 = vmatprep.mubr.bf16.mxu0 %v3250_v48  ;;  %1499 = vmatprep.mubr.bf16.mxu1 %v3250_v48  ;;  %v3229_v52 = vld [vmem:[#allocation5 + $0x188] ss:$16 sps:$4 sm:$0xff]  }
  0x49   :  { %1317 = vmatpush1.bf16.msra.mxu0 %v3180_v18  ;;  %1476 = vmatpush1.bf16.msra.mxu1 %v3181_v19  ;;  %v3230_v53 = vld [vmem:[#allocation5 + $0x1a4] ss:$16 sps:$4 sm:$0xff]   ;;  %v3232_v54 = vld [vmem:[#allocation5 + $0x1ac] ss:$16 sps:$4 sm:$0xff]   ;;  %v3234_v55 = vld [vmem:[#allocation5 + $0x1a0] ss:$16 sps:$4 sm:$0xff]  }
  0x4a   :  { %1318 = vmatprep.subr.bf16.mxu0 %v3182_v20  ;;  %1477 = vmatprep.subr.bf16.mxu1 %v3184_v21  ;;  %v3235_v56 = vld [vmem:[#allocation5 + $0x1a8] ss:$16 sps:$4 sm:$0xff]   ;;  %v3236_v57 = vld [vmem:[#allocation5 + $0x1c4] ss:$16 sps:$4 sm:$0xff]   ;;  %v3238_v58 = vld [vmem:[#allocation5 + $0x1cc] ss:$16 sps:$4 sm:$0xff]  }
  0x4b   :  { %v3240_v59 = vld [vmem:[#allocation5 + $0x1c0] ss:$16 sps:$4 sm:$0xff]   ;;  %v3241_v60 = vld [vmem:[#allocation5 + $0x1c8] ss:$16 sps:$4 sm:$0xff]   ;;  %v3242_v61 = vld [vmem:[#allocation5 + $0x1e4] ss:$16 sps:$4 sm:$0xff]  }
  0x4c   :  { %v3244_v62 = vld [vmem:[#allocation5 + $0x1ec] ss:$16 sps:$4 sm:$0xff]   ;;  %v3246_v63 = vld [vmem:[#allocation5 + $0x1e0] ss:$16 sps:$4 sm:$0xff]   ;;  %v3247_v0 = vld [vmem:[#allocation5 + $0x1e8] ss:$16 sps:$4 sm:$0xff]  }
  0x4d   :  { %1319 = vmatpush1.bf16.msra.mxu0 %v3186_v22  ;;  %1478 = vmatpush1.bf16.msra.mxu1 %v3187_v23  ;;  %v3253_v1 = vld [vmem:[#allocation5 + $0x204] ss:$16 sps:$4 sm:$0xff]   ;;  %v3256_v2 = vld [vmem:[#allocation5 + $0x20c] ss:$16 sps:$4 sm:$0xff]   ;;  %v3248_v3 = vld [vmem:[#allocation2] ss:$24 sps:$4 sm:$0xff]  }
  0x4e   :  { %1320 = vmatprep.subr.bf16.mxu0 %v3188_v24  ;;  %1479 = vmatprep.subr.bf16.mxu1 %v3190_v25  ;;  %v3251_v4 = vld [vmem:[#allocation5 + $0x200] ss:$16 sps:$4 sm:$0xff]   ;;  %v3254_v5 = vld [vmem:[#allocation5 + $0x208] ss:$16 sps:$4 sm:$0xff]   ;;  %v3259_v6 = vld [vmem:[#allocation5 + $0x224] ss:$16 sps:$4 sm:$0xff]  }
  0x4f   :  { %v3262_v7 = vld [vmem:[#allocation5 + $0x22c] ss:$16 sps:$4 sm:$0xff]   ;;  %v3257_v8 = vld [vmem:[#allocation5 + $0x220] ss:$16 sps:$4 sm:$0xff]   ;;  %v3260_v9 = vld [vmem:[#allocation5 + $0x228] ss:$16 sps:$4 sm:$0xff]  }
  0x50   :  { %v3265_v10 = vld [vmem:[#allocation5 + $0x244] ss:$16 sps:$4 sm:$0xff]   ;;  %v3268_v11 = vld [vmem:[#allocation5 + $0x24c] ss:$16 sps:$4 sm:$0xff]   ;;  %v3263_v12 = vld [vmem:[#allocation5 + $0x240] ss:$16 sps:$4 sm:$0xff]  }
  0x51   :  { %1321 = vmatpush1.bf16.msra.mxu0 %v3192_v26  ;;  %1480 = vmatpush1.bf16.msra.mxu1 %v3193_v27  ;;  %v3266_v13 = vld [vmem:[#allocation5 + $0x248] ss:$16 sps:$4 sm:$0xff]   ;;  %v3271_v14 = vld [vmem:[#allocation5 + $0x264] ss:$16 sps:$4 sm:$0xff]   ;;  %v3274_v15 = vld [vmem:[#allocation5 + $0x26c] ss:$16 sps:$4 sm:$0xff]  }
  0x52   :  { %1322 = vmatprep.subr.bf16.mxu0 %v3194_v28  ;;  %1481 = vmatprep.subr.bf16.mxu1 %v3196_v29  ;;  %v3269_v16 = vld [vmem:[#allocation5 + $0x260] ss:$16 sps:$4 sm:$0xff]   ;;  %v3272_v17 = vld [vmem:[#allocation5 + $0x268] ss:$16 sps:$4 sm:$0xff]   ;;  %v3277_v18 = vld [vmem:[#allocation5 + $0x284] ss:$16 sps:$4 sm:$0xff]  }
  0x53   :  { %v3280_v19 = vld [vmem:[#allocation5 + $0x28c] ss:$16 sps:$4 sm:$0xff]   ;;  %v3275_v20 = vld [vmem:[#allocation5 + $0x280] ss:$16 sps:$4 sm:$0xff]   ;;  %v3278_v21 = vld [vmem:[#allocation5 + $0x288] ss:$16 sps:$4 sm:$0xff]  }
  0x54   :  { %v3283_v22 = vld [vmem:[#allocation5 + $0x2a4] ss:$16 sps:$4 sm:$0xff]   ;;  %v3286_v23 = vld [vmem:[#allocation5 + $0x2ac] ss:$16 sps:$4 sm:$0xff]   ;;  %v3281_v25 = vld [vmem:[#allocation5 + $0x2a0] ss:$16 sps:$4 sm:$0xff]  }
  0x55   :  { %1323 = vmatpush1.bf16.msra.mxu0 %v3198_v30  ;;  %1482 = vmatpush1.bf16.msra.mxu1 %v3199_v31  ;;  %v3335_v24 = vld [vmem:[#allocation2 + $0x34] ss:$24 sps:$4 sm:$0xff]   ;;  %v3284_v26 = vld [vmem:[#allocation5 + $0x2a8] ss:$16 sps:$4 sm:$0xff]   ;;  %v3287_v30 = vld [vmem:[#allocation5 + $0x2c0] ss:$16 sps:$4 sm:$0xff]  }
  0x56   :  { %1324 = vmatprep.subr.bf16.mxu0 %v3200_v32  ;;  %1483 = vmatprep.subr.bf16.mxu1 %v3202_v33  ;;  %v3289_v27 = vld [vmem:[#allocation5 + $0x2c4] ss:$16 sps:$4 sm:$0xff]   ;;  %v3292_v28 = vld [vmem:[#allocation5 + $0x2cc] ss:$16 sps:$4 sm:$0xff]   ;;  %v3343_v29 = vld [vmem:[#allocation2 + $0x30] ss:$24 sps:$4 sm:$0xff]  }
  0x57   :  { %v3290_v31 = vld [vmem:[#allocation5 + $0x2c8] ss:$16 sps:$4 sm:$0xff]   ;;  %v3295_v32 = vld [vmem:[#allocation5 + $0x2e4] ss:$16 sps:$4 sm:$0xff]   ;;  %v3298_v33 = vld [vmem:[#allocation5 + $0x2ec] ss:$16 sps:$4 sm:$0xff]  }
  0x58   :  { %v3314_v48 = vld [vmem:[#allocation5 + $0x348] ss:$16 sps:$4 sm:$0xff]  }
  0x59   :  { %1325 = vmatpush1.bf16.msra.mxu0 %v3204_v34  ;;  %1484 = vmatpush1.bf16.msra.mxu1 %v3205_v35  ;;  %v3352_v34 = vld [vmem:[#allocation2 + $0xc] ss:$24 sps:$4 sm:$0xff]   ;;  %v3293_v35 = vld [vmem:[#allocation5 + $0x2e0] ss:$16 sps:$4 sm:$0xff]  }
  0x5a   :  { %1326 = vmatprep.subr.bf16.mxu0 %v3206_v36  ;;  %1485 = vmatprep.subr.bf16.mxu1 %v3208_v37  ;;  %v3296_v36 = vld [vmem:[#allocation5 + $0x2e8] ss:$16 sps:$4 sm:$0xff]   ;;  %v3301_v37 = vld [vmem:[#allocation5 + $0x304] ss:$16 sps:$4 sm:$0xff]  }
  0x5d   :  { %1327 = vmatpush1.bf16.msra.mxu0 %v3210_v38  ;;  %1486 = vmatpush1.bf16.msra.mxu1 %v3211_v39  ;;  %v3304_v38 = vld [vmem:[#allocation5 + $0x30c] ss:$16 sps:$4 sm:$0xff]   ;;  %v3299_v39 = vld [vmem:[#allocation5 + $0x300] ss:$16 sps:$4 sm:$0xff]  }
  0x5e   :  { %1328 = vmatprep.subr.bf16.mxu0 %v3212_v40  ;;  %1487 = vmatprep.subr.bf16.mxu1 %v3214_v41  ;;  %v3302_v40 = vld [vmem:[#allocation5 + $0x308] ss:$16 sps:$4 sm:$0xff]   ;;  %v3307_v41 = vld [vmem:[#allocation5 + $0x324] ss:$16 sps:$4 sm:$0xff]  }
  0x61   :  { %1329 = vmatpush1.bf16.msra.mxu0 %v3216_v42  ;;  %1488 = vmatpush1.bf16.msra.mxu1 %v3217_v43  ;;  %v3310_v42 = vld [vmem:[#allocation5 + $0x32c] ss:$16 sps:$4 sm:$0xff]   ;;  %v3305_v43 = vld [vmem:[#allocation5 + $0x320] ss:$16 sps:$4 sm:$0xff]  }
  0x62   :  { %1330 = vmatprep.subr.bf16.mxu0 %v3218_v44  ;;  %1489 = vmatprep.subr.bf16.mxu1 %v3220_v45  ;;  %v3308_v44 = vld [vmem:[#allocation5 + $0x328] ss:$16 sps:$4 sm:$0xff]   ;;  %v3313_v45 = vld [vmem:[#allocation5 + $0x344] ss:$16 sps:$4 sm:$0xff]  }
  0x65   :  { %1331 = vmatpush1.bf16.msra.mxu0 %v3222_v46  ;;  %1490 = vmatpush1.bf16.msra.mxu1 %v3223_v47  ;;  %v3316_v46 = vld [vmem:[#allocation5 + $0x34c] ss:$16 sps:$4 sm:$0xff]   ;;  %v3311_v47 = vld [vmem:[#allocation5 + $0x340] ss:$16 sps:$4 sm:$0xff]  }
  0x66   :  { %1332 = vmatprep.subr.bf16.mxu0 %v3224_v49  ;;  %1491 = vmatprep.subr.bf16.mxu1 %v3226_v50  ;;  %v3319_v49 = vld [vmem:[#allocation5 + $0x364] ss:$16 sps:$4 sm:$0xff]   ;;  %v3322_v50 = vld [vmem:[#allocation5 + $0x36c] ss:$16 sps:$4 sm:$0xff]  }
  0x69   :  { %1333 = vmatpush1.bf16.msra.mxu0 %v3228_v51  ;;  %1492 = vmatpush1.bf16.msra.mxu1 %v3229_v52  ;;  %v3317_v51 = vld [vmem:[#allocation5 + $0x360] ss:$16 sps:$4 sm:$0xff]   ;;  %v3320_v52 = vld [vmem:[#allocation5 + $0x368] ss:$16 sps:$4 sm:$0xff]  }
  0x6a   :  { %1334 = vmatprep.subr.bf16.mxu0 %v3230_v53  ;;  %1493 = vmatprep.subr.bf16.mxu1 %v3232_v54  ;;  %v3325_v53 = vld [vmem:[#allocation5 + $0x384] ss:$16 sps:$4 sm:$0xff]   ;;  %v3328_v54 = vld [vmem:[#allocation5 + $0x38c] ss:$16 sps:$4 sm:$0xff]  }
  0x6d   :  { %1335 = vmatpush1.bf16.msra.mxu0 %v3234_v55  ;;  %1494 = vmatpush1.bf16.msra.mxu1 %v3235_v56  ;;  %v3323_v55 = vld [vmem:[#allocation5 + $0x380] ss:$16 sps:$4 sm:$0xff]   ;;  %v3326_v56 = vld [vmem:[#allocation5 + $0x388] ss:$16 sps:$4 sm:$0xff]  }
  0x6e   :  { %1336 = vmatprep.subr.bf16.mxu0 %v3236_v57  ;;  %1495 = vmatprep.subr.bf16.mxu1 %v3238_v58  ;;  %v3331_v57 = vld [vmem:[#allocation5 + $0x3a4] ss:$16 sps:$4 sm:$0xff]   ;;  %v3334_v58 = vld [vmem:[#allocation5 + $0x3ac] ss:$16 sps:$4 sm:$0xff]  }
  0x71   :  { %1337 = vmatpush1.bf16.msra.mxu0 %v3240_v59  ;;  %1496 = vmatpush1.bf16.msra.mxu1 %v3241_v60  ;;  %v3329_v59 = vld [vmem:[#allocation5 + $0x3a0] ss:$16 sps:$4 sm:$0xff]   ;;  %v3332_v60 = vld [vmem:[#allocation5 + $0x3a8] ss:$16 sps:$4 sm:$0xff]  }
  0x72   :  { %1338 = vmatprep.subr.bf16.mxu0 %v3242_v61  ;;  %1497 = vmatprep.subr.bf16.mxu1 %v3244_v62  ;;  %v3339_v61 = vld [vmem:[#allocation5 + $0x3c4] ss:$16 sps:$4 sm:$0xff]   ;;  %v3342_v62 = vld [vmem:[#allocation5 + $0x3cc] ss:$16 sps:$4 sm:$0xff]  }
  0x75   :  { %1339 = vmatpush1.bf16.msra.mxu0 %v3246_v63  ;;  %1498 = vmatpush1.bf16.msra.mxu1 %v3247_v0  ;;  %v3337_v63 = vld [vmem:[#allocation5 + $0x3c0] ss:$16 sps:$4 sm:$0xff]   ;;  %v3340_v0 = vld [vmem:[#allocation5 + $0x3c8] ss:$16 sps:$4 sm:$0xff]  }
  0x76   :  { %1361 = vmatprep.subr.bf16.mxu0 %v3253_v1  ;;  %1520 = vmatprep.subr.bf16.mxu1 %v3256_v2  ;;  %v3346_v1 = vld [vmem:[#allocation5 + $0x3e4] ss:$16 sps:$4 sm:$0xff]   ;;  %v3349_v2 = vld [vmem:[#allocation5 + $0x3ec] ss:$16 sps:$4 sm:$0xff]  }
  0x78   :  { %1341 = vmatmul.mubr.bf16.vlgmr.msra.gmra.mrb[0].mxu0 %v3248_v3  ;;  %1500 = vmatmul.mubr.bf16.vlgmr.msra.gmra.mrb[0].mxu1 %v3248_v3  ;;  %v3344_v3 = vld [vmem:[#allocation5 + $0x3e0] ss:$16 sps:$4 sm:$0xff]  }
  0x79   :  { %1362 = vmatpush1.bf16.msra.mxu0 %v3251_v4  ;;  %1521 = vmatpush1.bf16.msra.mxu1 %v3254_v5  ;;  %v3347_v4 = vld [vmem:[#allocation5 + $0x3e8] ss:$16 sps:$4 sm:$0xff]   ;;  %v3355_v5 = vld [vmem:[#allocation5 + $0x404] ss:$16 sps:$4 sm:$0xff]  }
  0x7a   :  { %1363 = vmatprep.subr.bf16.mxu0 %v3259_v6  ;;  %1522 = vmatprep.subr.bf16.mxu1 %v3262_v7  ;;  %v3358_v6 = vld [vmem:[#allocation5 + $0x40c] ss:$16 sps:$4 sm:$0xff]   ;;  %v3350_v7 = vld [vmem:[#allocation2 + $0x8] ss:$24 sps:$4 sm:$0xff]  }
  0x7b   :  { %1350 = vmatprep.mubr.bf16.mxu0 %v3335_v24  ;;  %1509 = vmatprep.mubr.bf16.mxu1 %v3335_v24  ;;  %v3374_v24 = vld [vmem:[#allocation5 + $0x468] ss:$16 sps:$4 sm:$0xff]  }
  0x7d   :  { %1364 = vmatpush1.bf16.msra.mxu0 %v3257_v8  ;;  %1523 = vmatpush1.bf16.msra.mxu1 %v3260_v9  ;;  %v3353_v8 = vld [vmem:[#allocation5 + $0x400] ss:$16 sps:$4 sm:$0xff]   ;;  %v3356_v9 = vld [vmem:[#allocation5 + $0x408] ss:$16 sps:$4 sm:$0xff]  }
  0x7e   :  { %1365 = vmatprep.subr.bf16.mxu0 %v3265_v10  ;;  %1524 = vmatprep.subr.bf16.mxu1 %v3268_v11  ;;  %v3361_v10 = vld [vmem:[#allocation5 + $0x424] ss:$16 sps:$4 sm:$0xff]   ;;  %v3364_v11 = vld [vmem:[#allocation5 + $0x42c] ss:$16 sps:$4 sm:$0xff]  }
  0x80   :  { %1351 = vmatmul.mubr.bf16.gmra.mrb[4].mxu0 %v3343_v29  ;;  %1510 = vmatmul.mubr.bf16.gmra.mrb[4].mxu1 %v3343_v29  ;;  %v3385_v29 = vld [vmem:[#allocation5 + $0x4a4] ss:$16 sps:$4 sm:$0xff]  }
  0x81   :  { %1366 = vmatpush1.bf16.msra.mxu0 %v3263_v12  ;;  %1525 = vmatpush1.bf16.msra.mxu1 %v3266_v13  ;;  %v3437_v12 = vld [vmem:[#allocation2 + $0x3c] ss:$24 sps:$4 sm:$0xff]   ;;  %v3359_v13 = vld [vmem:[#allocation5 + $0x420] ss:$16 sps:$4 sm:$0xff]  }
  0x82   :  { %1367 = vmatprep.subr.bf16.mxu0 %v3271_v14  ;;  %1526 = vmatprep.subr.bf16.mxu1 %v3274_v15  ;;  %v3362_v14 = vld [vmem:[#allocation5 + $0x428] ss:$16 sps:$4 sm:$0xff]   ;;  %v3367_v15 = vld [vmem:[#allocation5 + $0x444] ss:$16 sps:$4 sm:$0xff]  }
  0x83   :  { %1393 = vmatprep.mubr.bf16.mxu0 %v3352_v34  ;;  %1552 = vmatprep.mubr.bf16.mxu1 %v3352_v34  ;;  %v3394_v34 = vld [vmem:[#allocation5 + $0x4cc] ss:$16 sps:$4 sm:$0xff]  }
  0x85   :  { %1368 = vmatpush1.bf16.msra.mxu0 %v3269_v16  ;;  %1527 = vmatpush1.bf16.msra.mxu1 %v3272_v17  ;;  %v3370_v16 = vld [vmem:[#allocation5 + $0x44c] ss:$16 sps:$4 sm:$0xff]   ;;  %v3365_v17 = vld [vmem:[#allocation5 + $0x440] ss:$16 sps:$4 sm:$0xff]  }
  0x86   :  { %1369 = vmatprep.subr.bf16.mxu0 %v3277_v18  ;;  %1528 = vmatprep.subr.bf16.mxu1 %v3280_v19  ;;  %v3368_v18 = vld [vmem:[#allocation5 + $0x448] ss:$16 sps:$4 sm:$0xff]  }
  0x87   :  { %v3439_v19 = vld [vmem:[#allocation2 + $0x38] ss:$24 sps:$4 sm:$0xff]  }
  0x89   :  { %1370 = vmatpush1.bf16.msra.mxu0 %v3275_v20  ;;  %1529 = vmatpush1.bf16.msra.mxu1 %v3278_v21  ;;  %v3373_v20 = vld [vmem:[#allocation5 + $0x464] ss:$16 sps:$4 sm:$0xff]   ;;  %v3376_v21 = vld [vmem:[#allocation5 + $0x46c] ss:$16 sps:$4 sm:$0xff]  }
  0x8a   :  { %1371 = vmatprep.subr.bf16.mxu0 %v3283_v22  ;;  %1530 = vmatprep.subr.bf16.mxu1 %v3286_v23  ;;  %v3454_v22 = vld [vmem:[#allocation2 + $0x14] ss:$24 sps:$4 sm:$0xff]   ;;  %v3371_v23 = vld [vmem:[#allocation5 + $0x460] ss:$16 sps:$4 sm:$0xff]  }
  0x8d   :  { %1372 = vmatpush1.bf16.msra.mxu0 %v3281_v25  ;;  %1531 = vmatpush1.bf16.msra.mxu1 %v3284_v26  ;;  %v3379_v25 = vld [vmem:[#allocation5 + $0x484] ss:$16 sps:$4 sm:$0xff]   ;;  %v3382_v26 = vld [vmem:[#allocation5 + $0x48c] ss:$16 sps:$4 sm:$0xff]  }
  0x8e   :  { %1373 = vmatprep.subr.bf16.mxu0 %v3289_v27  ;;  %1532 = vmatprep.subr.bf16.mxu1 %v3292_v28  ;;  %v3377_v27 = vld [vmem:[#allocation5 + $0x480] ss:$16 sps:$4 sm:$0xff]   ;;  %v3380_v28 = vld [vmem:[#allocation5 + $0x488] ss:$16 sps:$4 sm:$0xff]  }
  0x91   :  { %1374 = vmatpush1.bf16.msra.mxu0 %v3287_v30  ;;  %1533 = vmatpush1.bf16.msra.mxu1 %v3290_v31  ;;  %v3388_v30 = vld [vmem:[#allocation5 + $0x4ac] ss:$16 sps:$4 sm:$0xff]   ;;  %v3383_v31 = vld [vmem:[#allocation5 + $0x4a0] ss:$16 sps:$4 sm:$0xff]  }
  0x92   :  { %1375 = vmatprep.subr.bf16.mxu0 %v3295_v32  ;;  %1534 = vmatprep.subr.bf16.mxu1 %v3298_v33  ;;  %v3386_v32 = vld [vmem:[#allocation5 + $0x4a8] ss:$16 sps:$4 sm:$0xff]   ;;  %v3391_v33 = vld [vmem:[#allocation5 + $0x4c4] ss:$16 sps:$4 sm:$0xff]  }
  0x95   :  { %1376 = vmatpush1.bf16.msra.mxu0 %v3293_v35  ;;  %1535 = vmatpush1.bf16.msra.mxu1 %v3296_v36  ;;  %v3389_v35 = vld [vmem:[#allocation5 + $0x4c0] ss:$16 sps:$4 sm:$0xff]   ;;  %v3392_v36 = vld [vmem:[#allocation5 + $0x4c8] ss:$16 sps:$4 sm:$0xff]  }
  0x96   :  { %1377 = vmatprep.subr.bf16.mxu0 %v3301_v37  ;;  %1536 = vmatprep.subr.bf16.mxu1 %v3304_v38  ;;  %v3397_v37 = vld [vmem:[#allocation5 + $0x4e4] ss:$16 sps:$4 sm:$0xff]   ;;  %v3400_v38 = vld [vmem:[#allocation5 + $0x4ec] ss:$16 sps:$4 sm:$0xff]  }
  0x99   :  { %1378 = vmatpush1.bf16.msra.mxu0 %v3299_v39  ;;  %1537 = vmatpush1.bf16.msra.mxu1 %v3302_v40  ;;  %v3395_v39 = vld [vmem:[#allocation5 + $0x4e0] ss:$16 sps:$4 sm:$0xff]   ;;  %v3398_v40 = vld [vmem:[#allocation5 + $0x4e8] ss:$16 sps:$4 sm:$0xff]  }
  0x9a   :  { %1379 = vmatprep.subr.bf16.mxu0 %v3307_v41  ;;  %1538 = vmatprep.subr.bf16.mxu1 %v3310_v42  ;;  %v3403_v41 = vld [vmem:[#allocation5 + $0x504] ss:$16 sps:$4 sm:$0xff]   ;;  %v3406_v42 = vld [vmem:[#allocation5 + $0x50c] ss:$16 sps:$4 sm:$0xff]  }
  0x9d   :  { %1380 = vmatpush1.bf16.msra.mxu0 %v3305_v43  ;;  %1539 = vmatpush1.bf16.msra.mxu1 %v3308_v44  ;;  %v3401_v43 = vld [vmem:[#allocation5 + $0x500] ss:$16 sps:$4 sm:$0xff]   ;;  %v3404_v44 = vld [vmem:[#allocation5 + $0x508] ss:$16 sps:$4 sm:$0xff]  }
  0x9e   :  { %1381 = vmatprep.subr.bf16.mxu0 %v3313_v45  ;;  %1540 = vmatprep.subr.bf16.mxu1 %v3316_v46  ;;  %v3409_v45 = vld [vmem:[#allocation5 + $0x524] ss:$16 sps:$4 sm:$0xff]   ;;  %v3412_v46 = vld [vmem:[#allocation5 + $0x52c] ss:$16 sps:$4 sm:$0xff]  }
  0xa1   :  { %1382 = vmatpush1.bf16.msra.mxu0 %v3311_v47  ;;  %1541 = vmatpush1.bf16.msra.mxu1 %v3314_v48  ;;  %v3407_v47 = vld [vmem:[#allocation5 + $0x520] ss:$16 sps:$4 sm:$0xff]   ;;  %v3410_v48 = vld [vmem:[#allocation5 + $0x528] ss:$16 sps:$4 sm:$0xff]  }
  0xa2   :  { %1383 = vmatprep.subr.bf16.mxu0 %v3319_v49  ;;  %1542 = vmatprep.subr.bf16.mxu1 %v3322_v50  ;;  %v3415_v49 = vld [vmem:[#allocation5 + $0x544] ss:$16 sps:$4 sm:$0xff]   ;;  %v3418_v50 = vld [vmem:[#allocation5 + $0x54c] ss:$16 sps:$4 sm:$0xff]  }
  0xa5   :  { %1384 = vmatpush1.bf16.msra.mxu0 %v3317_v51  ;;  %1543 = vmatpush1.bf16.msra.mxu1 %v3320_v52  ;;  %v3413_v51 = vld [vmem:[#allocation5 + $0x540] ss:$16 sps:$4 sm:$0xff]   ;;  %v3416_v52 = vld [vmem:[#allocation5 + $0x548] ss:$16 sps:$4 sm:$0xff]  }
  0xa6   :  { %1385 = vmatprep.subr.bf16.mxu0 %v3325_v53  ;;  %1544 = vmatprep.subr.bf16.mxu1 %v3328_v54  ;;  %v3421_v53 = vld [vmem:[#allocation5 + $0x564] ss:$16 sps:$4 sm:$0xff]   ;;  %v3424_v54 = vld [vmem:[#allocation5 + $0x56c] ss:$16 sps:$4 sm:$0xff]  }
  0xa9   :  { %1386 = vmatpush1.bf16.msra.mxu0 %v3323_v55  ;;  %1545 = vmatpush1.bf16.msra.mxu1 %v3326_v56  ;;  %v3419_v55 = vld [vmem:[#allocation5 + $0x560] ss:$16 sps:$4 sm:$0xff]   ;;  %v3422_v56 = vld [vmem:[#allocation5 + $0x568] ss:$16 sps:$4 sm:$0xff]  }
  0xaa   :  { %1387 = vmatprep.subr.bf16.mxu0 %v3331_v57  ;;  %1546 = vmatprep.subr.bf16.mxu1 %v3334_v58  ;;  %v3427_v57 = vld [vmem:[#allocation5 + $0x584] ss:$16 sps:$4 sm:$0xff]   ;;  %v3430_v58 = vld [vmem:[#allocation5 + $0x58c] ss:$16 sps:$4 sm:$0xff]  }
  0xad   :  { %1388 = vmatpush1.bf16.msra.mxu0 %v3329_v59  ;;  %1547 = vmatpush1.bf16.msra.mxu1 %v3332_v60  ;;  %v3425_v59 = vld [vmem:[#allocation5 + $0x580] ss:$16 sps:$4 sm:$0xff]   ;;  %v3428_v60 = vld [vmem:[#allocation5 + $0x588] ss:$16 sps:$4 sm:$0xff]  }
  0xae   :  { %1389 = vmatprep.subr.bf16.mxu0 %v3339_v61  ;;  %1548 = vmatprep.subr.bf16.mxu1 %v3342_v62  ;;  %v3433_v61 = vld [vmem:[#allocation5 + $0x5a4] ss:$16 sps:$4 sm:$0xff]   ;;  %v3436_v62 = vld [vmem:[#allocation5 + $0x5ac] ss:$16 sps:$4 sm:$0xff]  }
  0xb1   :  { %1390 = vmatpush1.bf16.msra.mxu0 %v3337_v63  ;;  %1549 = vmatpush1.bf16.msra.mxu1 %v3340_v0  ;;  %v3431_v63 = vld [vmem:[#allocation5 + $0x5a0] ss:$16 sps:$4 sm:$0xff]   ;;  %v3434_v0 = vld [vmem:[#allocation5 + $0x5a8] ss:$16 sps:$4 sm:$0xff]  }
  0xb2   :  { %1391 = vmatprep.subr.bf16.mxu0 %v3346_v1  ;;  %1550 = vmatprep.subr.bf16.mxu1 %v3349_v2  ;;  %v3442_v1 = vld [vmem:[#allocation5 + $0x5c4] ss:$16 sps:$4 sm:$0xff]   ;;  %v3445_v2 = vld [vmem:[#allocation5 + $0x5cc] ss:$16 sps:$4 sm:$0xff]  }
  0xb5   :  { %1392 = vmatpush1.bf16.msra.mxu0 %v3344_v3  ;;  %1551 = vmatpush1.bf16.msra.mxu1 %v3347_v4  ;;  %v3440_v3 = vld [vmem:[#allocation5 + $0x5c0] ss:$16 sps:$4 sm:$0xff]   ;;  %v3443_v4 = vld [vmem:[#allocation5 + $0x5c8] ss:$16 sps:$4 sm:$0xff]  }
  0xb6   :  { %1414 = vmatprep.subr.bf16.mxu0 %v3355_v5  ;;  %1573 = vmatprep.subr.bf16.mxu1 %v3358_v6  ;;  %v3448_v5 = vld [vmem:[#allocation5 + $0x5e4] ss:$16 sps:$4 sm:$0xff]   ;;  %v3451_v6 = vld [vmem:[#allocation5 + $0x5ec] ss:$16 sps:$4 sm:$0xff]  }
  0xb8   :  { %1394 = vmatmul.mubr.bf16.vlgmr.msra.gmra.mrb[0].mxu0 %v3350_v7  ;;  %1553 = vmatmul.mubr.bf16.vlgmr.msra.gmra.mrb[0].mxu1 %v3350_v7  ;;  %v3446_v7 = vld [vmem:[#allocation5 + $0x5e0] ss:$16 sps:$4 sm:$0xff]  }
  0xb9   :  { %1415 = vmatpush1.bf16.msra.mxu0 %v3353_v8  ;;  %1574 = vmatpush1.bf16.msra.mxu1 %v3356_v9  ;;  %v3449_v8 = vld [vmem:[#allocation5 + $0x5e8] ss:$16 sps:$4 sm:$0xff]   ;;  %v3460_v9 = vld [vmem:[#allocation7 + $0x4] ss:$16 sps:$4 sm:$0xff]  }
  0xba   :  { %1416 = vmatprep.subr.bf16.mxu0 %v3361_v10  ;;  %1575 = vmatprep.subr.bf16.mxu1 %v3364_v11  ;;  %v3463_v10 = vld [vmem:[#allocation7 + $0xc] ss:$16 sps:$4 sm:$0xff]   ;;  %v3452_v11 = vld [vmem:[#allocation2 + $0x10] ss:$24 sps:$4 sm:$0xff]  }
  0xbb   :  { %1403 = vmatprep.mubr.bf16.mxu0 %v3437_v12  ;;  %1562 = vmatprep.mubr.bf16.mxu1 %v3437_v12  ;;  %v3455_v12 = vld [vmem:[#allocation2 + $0x44] ss:$24 sps:$4 sm:$0xff]  }
  0xbd   :  { %1417 = vmatpush1.bf16.msra.mxu0 %v3359_v13  ;;  %1576 = vmatpush1.bf16.msra.mxu1 %v3362_v14  ;;  %v3458_v13 = vld [vmem:[#allocation7] ss:$16 sps:$4 sm:$0xff]   ;;  %v3461_v14 = vld [vmem:[#allocation7 + $0x8] ss:$16 sps:$4 sm:$0xff]  }
  0xbe   :  { %1418 = vmatprep.subr.bf16.mxu0 %v3367_v15  ;;  %1577 = vmatprep.subr.bf16.mxu1 %v3370_v16  ;;  %v3466_v15 = vld [vmem:[#allocation7 + $0x24] ss:$16 sps:$4 sm:$0xff]   ;;  %v3469_v16 = vld [vmem:[#allocation7 + $0x2c] ss:$16 sps:$4 sm:$0xff]  }
  0xc0   :  { %1404 = vmatmul.mubr.bf16.gmra.mrb[4].mxu0 %v3439_v19  ;;  %1563 = vmatmul.mubr.bf16.gmra.mrb[4].mxu1 %v3439_v19  ;;  %v3472_v19 = vld [vmem:[#allocation7 + $0x44] ss:$16 sps:$4 sm:$0xff]  }
  0xc1   :  { %1419 = vmatpush1.bf16.msra.mxu0 %v3365_v17  ;;  %1578 = vmatpush1.bf16.msra.mxu1 %v3368_v18  ;;  %v3464_v17 = vld [vmem:[#allocation7 + $0x20] ss:$16 sps:$4 sm:$0xff]   ;;  %v3467_v18 = vld [vmem:[#allocation7 + $0x28] ss:$16 sps:$4 sm:$0xff]  }
  0xc2   :  { %1420 = vmatprep.subr.bf16.mxu0 %v3373_v20  ;;  %1579 = vmatprep.subr.bf16.mxu1 %v3376_v21  ;;  %v3475_v20 = vld [vmem:[#allocation7 + $0x4c] ss:$16 sps:$4 sm:$0xff]   ;;  %v3457_v21 = vld [vmem:[#allocation2 + $0x40] ss:$24 sps:$4 sm:$0xff]  }
  0xc3   :  { %1446 = vmatprep.mubr.bf16.mxu0 %v3454_v22  ;;  %1605 = vmatprep.mubr.bf16.mxu1 %v3454_v22  ;;  %v3470_v22 = vld [vmem:[#allocation7 + $0x40] ss:$16 sps:$4 sm:$0xff]  }
  0xc5   :  { %1421 = vmatpush1.bf16.msra.mxu0 %v3371_v23  ;;  %1580 = vmatpush1.bf16.msra.mxu1 %v3374_v24  ;;  %v3473_v23 = vld [vmem:[#allocation7 + $0x48] ss:$16 sps:$4 sm:$0xff]   ;;  %v3478_v24 = vld [vmem:[#allocation7 + $0x64] ss:$16 sps:$4 sm:$0xff]  }
  0xc6   :  { %1422 = vmatprep.subr.bf16.mxu0 %v3379_v25  ;;  %1581 = vmatprep.subr.bf16.mxu1 %v3382_v26  ;;  %v3481_v25 = vld [vmem:[#allocation7 + $0x6c] ss:$16 sps:$4 sm:$0xff]   ;;  %v3476_v26 = vld [vmem:[#allocation7 + $0x60] ss:$16 sps:$4 sm:$0xff]  }
  0xc9   :  { %1423 = vmatpush1.bf16.msra.mxu0 %v3377_v27  ;;  %1582 = vmatpush1.bf16.msra.mxu1 %v3380_v28  ;;  %v3479_v27 = vld [vmem:[#allocation7 + $0x68] ss:$16 sps:$4 sm:$0xff]   ;;  %v3484_v28 = vld [vmem:[#allocation7 + $0x84] ss:$16 sps:$4 sm:$0xff]  }
  0xca   :  { %1424 = vmatprep.subr.bf16.mxu0 %v3385_v29  ;;  %1583 = vmatprep.subr.bf16.mxu1 %v3388_v30  ;;  %v3487_v29 = vld [vmem:[#allocation7 + $0x8c] ss:$16 sps:$4 sm:$0xff]   ;;  %v3482_v30 = vld [vmem:[#allocation7 + $0x80] ss:$16 sps:$4 sm:$0xff]  }
  0xcd   :  { %1425 = vmatpush1.bf16.msra.mxu0 %v3383_v31  ;;  %1584 = vmatpush1.bf16.msra.mxu1 %v3386_v32  ;;  %v3485_v31 = vld [vmem:[#allocation7 + $0x88] ss:$16 sps:$4 sm:$0xff]   ;;  %v3490_v32 = vld [vmem:[#allocation7 + $0xa4] ss:$16 sps:$4 sm:$0xff]  }
  0xce   :  { %1426 = vmatprep.subr.bf16.mxu0 %v3391_v33  ;;  %1585 = vmatprep.subr.bf16.mxu1 %v3394_v34  ;;  %v3493_v33 = vld [vmem:[#allocation7 + $0xac] ss:$16 sps:$4 sm:$0xff]   ;;  %v3488_v34 = vld [vmem:[#allocation7 + $0xa0] ss:$16 sps:$4 sm:$0xff]  }
  0xd1   :  { %1427 = vmatpush1.bf16.msra.mxu0 %v3389_v35  ;;  %1586 = vmatpush1.bf16.msra.mxu1 %v3392_v36  ;;  %v3491_v35 = vld [vmem:[#allocation7 + $0xa8] ss:$16 sps:$4 sm:$0xff]   ;;  %v3496_v36 = vld [vmem:[#allocation7 + $0xc4] ss:$16 sps:$4 sm:$0xff]  }
  0xd2   :  { %1428 = vmatprep.subr.bf16.mxu0 %v3397_v37  ;;  %1587 = vmatprep.subr.bf16.mxu1 %v3400_v38  ;;  %v3499_v37 = vld [vmem:[#allocation7 + $0xcc] ss:$16 sps:$4 sm:$0xff]   ;;  %v3494_v38 = vld [vmem:[#allocation7 + $0xc0] ss:$16 sps:$4 sm:$0xff]  }
  0xd5   :  { %1429 = vmatpush1.bf16.msra.mxu0 %v3395_v39  ;;  %1588 = vmatpush1.bf16.msra.mxu1 %v3398_v40  ;;  %v3497_v39 = vld [vmem:[#allocation7 + $0xc8] ss:$16 sps:$4 sm:$0xff]   ;;  %v3502_v40 = vld [vmem:[#allocation7 + $0xe4] ss:$16 sps:$4 sm:$0xff]  }
  0xd6   :  { %1430 = vmatprep.subr.bf16.mxu0 %v3403_v41  ;;  %1589 = vmatprep.subr.bf16.mxu1 %v3406_v42  ;;  %v3505_v41 = vld [vmem:[#allocation7 + $0xec] ss:$16 sps:$4 sm:$0xff]   ;;  %v3500_v42 = vld [vmem:[#allocation7 + $0xe0] ss:$16 sps:$4 sm:$0xff]  }
  0xd9   :  { %1431 = vmatpush1.bf16.msra.mxu0 %v3401_v43  ;;  %1590 = vmatpush1.bf16.msra.mxu1 %v3404_v44  ;;  %v3503_v43 = vld [vmem:[#allocation7 + $0xe8] ss:$16 sps:$4 sm:$0xff]   ;;  %v3508_v44 = vld [vmem:[#allocation7 + $0x104] ss:$16 sps:$4 sm:$0xff]  }
  0xda   :  { %1432 = vmatprep.subr.bf16.mxu0 %v3409_v45  ;;  %1591 = vmatprep.subr.bf16.mxu1 %v3412_v46  ;;  %v3511_v45 = vld [vmem:[#allocation7 + $0x10c] ss:$16 sps:$4 sm:$0xff]   ;;  %v3506_v46 = vld [vmem:[#allocation7 + $0x100] ss:$16 sps:$4 sm:$0xff]  }
  0xdd   :  { %1433 = vmatpush1.bf16.msra.mxu0 %v3407_v47  ;;  %1592 = vmatpush1.bf16.msra.mxu1 %v3410_v48  ;;  %v3509_v47 = vld [vmem:[#allocation7 + $0x108] ss:$16 sps:$4 sm:$0xff]   ;;  %v3514_v48 = vld [vmem:[#allocation7 + $0x124] ss:$16 sps:$4 sm:$0xff]  }
  0xde   :  { %1434 = vmatprep.subr.bf16.mxu0 %v3415_v49  ;;  %1593 = vmatprep.subr.bf16.mxu1 %v3418_v50  ;;  %v3517_v49 = vld [vmem:[#allocation7 + $0x12c] ss:$16 sps:$4 sm:$0xff]   ;;  %v3512_v50 = vld [vmem:[#allocation7 + $0x120] ss:$16 sps:$4 sm:$0xff]  }
  0xe1   :  { %1435 = vmatpush1.bf16.msra.mxu0 %v3413_v51  ;;  %1594 = vmatpush1.bf16.msra.mxu1 %v3416_v52  ;;  %v3515_v51 = vld [vmem:[#allocation7 + $0x128] ss:$16 sps:$4 sm:$0xff]   ;;  %v3520_v52 = vld [vmem:[#allocation7 + $0x144] ss:$16 sps:$4 sm:$0xff]  }
  0xe2   :  { %1436 = vmatprep.subr.bf16.mxu0 %v3421_v53  ;;  %1595 = vmatprep.subr.bf16.mxu1 %v3424_v54  ;;  %v3523_v53 = vld [vmem:[#allocation7 + $0x14c] ss:$16 sps:$4 sm:$0xff]   ;;  %v3518_v54 = vld [vmem:[#allocation7 + $0x140] ss:$16 sps:$4 sm:$0xff]  }
  0xe5   :  { %1437 = vmatpush1.bf16.msra.mxu0 %v3419_v55  ;;  %1596 = vmatpush1.bf16.msra.mxu1 %v3422_v56  ;;  %v3521_v55 = vld [vmem:[#allocation7 + $0x148] ss:$16 sps:$4 sm:$0xff]   ;;  %v3526_v56 = vld [vmem:[#allocation7 + $0x164] ss:$16 sps:$4 sm:$0xff]  }
  0xe6   :  { %1438 = vmatprep.subr.bf16.mxu0 %v3427_v57  ;;  %1597 = vmatprep.subr.bf16.mxu1 %v3430_v58  ;;  %v3529_v57 = vld [vmem:[#allocation7 + $0x16c] ss:$16 sps:$4 sm:$0xff]   ;;  %v3524_v58 = vld [vmem:[#allocation7 + $0x160] ss:$16 sps:$4 sm:$0xff]  }
  0xe9   :  { %1439 = vmatpush1.bf16.msra.mxu0 %v3425_v59  ;;  %1598 = vmatpush1.bf16.msra.mxu1 %v3428_v60  ;;  %v3527_v59 = vld [vmem:[#allocation7 + $0x168] ss:$16 sps:$4 sm:$0xff]   ;;  %v3532_v60 = vld [vmem:[#allocation7 + $0x184] ss:$16 sps:$4 sm:$0xff]  }
  0xea   :  { %1440 = vmatprep.subr.bf16.mxu0 %v3433_v61  ;;  %1599 = vmatprep.subr.bf16.mxu1 %v3436_v62  ;;  %v3535_v61 = vld [vmem:[#allocation7 + $0x18c] ss:$16 sps:$4 sm:$0xff]   ;;  %v3530_v62 = vld [vmem:[#allocation7 + $0x180] ss:$16 sps:$4 sm:$0xff]  }
  0xed   :  { %1441 = vmatpush1.bf16.msra.mxu0 %v3431_v63  ;;  %1600 = vmatpush1.bf16.msra.mxu1 %v3434_v0  ;;  %v3533_v63 = vld [vmem:[#allocation7 + $0x188] ss:$16 sps:$4 sm:$0xff]   ;;  %v3538_v0 = vld [vmem:[#allocation7 + $0x1a4] ss:$16 sps:$4 sm:$0xff]  }
  0xee   :  { %1442 = vmatprep.subr.bf16.mxu0 %v3442_v1  ;;  %1601 = vmatprep.subr.bf16.mxu1 %v3445_v2  ;;  %v3541_v1 = vld [vmem:[#allocation7 + $0x1ac] ss:$16 sps:$4 sm:$0xff]   ;;  %v3536_v2 = vld [vmem:[#allocation7 + $0x1a0] ss:$16 sps:$4 sm:$0xff]  }
  0xf1   :  { %1443 = vmatpush1.bf16.msra.mxu0 %v3440_v3  ;;  %1602 = vmatpush1.bf16.msra.mxu1 %v3443_v4  ;;  %v3539_v3 = vld [vmem:[#allocation7 + $0x1a8] ss:$16 sps:$4 sm:$0xff]   ;;  %v3544_v4 = vld [vmem:[#allocation7 + $0x1c4] ss:$16 sps:$4 sm:$0xff]  }
  0xf2   :  { %1444 = vmatprep.subr.bf16.mxu0 %v3448_v5  ;;  %1603 = vmatprep.subr.bf16.mxu1 %v3451_v6  ;;  %v3547_v5 = vld [vmem:[#allocation7 + $0x1cc] ss:$16 sps:$4 sm:$0xff]   ;;  %v3542_v6 = vld [vmem:[#allocation7 + $0x1c0] ss:$16 sps:$4 sm:$0xff]  }
  0xf5   :  { %1445 = vmatpush1.bf16.msra.mxu0 %v3446_v7  ;;  %1604 = vmatpush1.bf16.msra.mxu1 %v3449_v8  ;;  %v3545_v7 = vld [vmem:[#allocation7 + $0x1c8] ss:$16 sps:$4 sm:$0xff]   ;;  %v3550_v8 = vld [vmem:[#allocation7 + $0x1e4] ss:$16 sps:$4 sm:$0xff]  }
  0xf6   :  { %2424 = vmatprep.subr.bf16.mxu0 %v3460_v9  ;;  %2530 = vmatprep.subr.bf16.mxu1 %v3463_v10  ;;  %v3553_v9 = vld [vmem:[#allocation7 + $0x1ec] ss:$16 sps:$4 sm:$0xff]   ;;  %v3548_v10 = vld [vmem:[#allocation7 + $0x1e0] ss:$16 sps:$4 sm:$0xff]  }
  0xf8   :  { %1447 = vmatmul.mubr.bf16.vlgmr.msra.gmra.mrb[0].mxu0 %v3452_v11  ;;  %1606 = vmatmul.mubr.bf16.vlgmr.msra.gmra.mrb[0].mxu1 %v3452_v11  ;;  %v3551_v11 = vld [vmem:[#allocation7 + $0x1e8] ss:$16 sps:$4 sm:$0xff]  }
  0xf9   :  { %1456 = vmatprep.mubr.bf16.mxu0 %v3455_v12  ;;  %1615 = vmatprep.mubr.bf16.mxu1 %v3455_v12  ;;  %v3556_v12 = vld [vmem:[#allocation7 + $0x204] ss:$16 sps:$4 sm:$0xff]  }
  0xfa   :  { %2425 = vmatpush1.bf16.msra.mxu0 %v3458_v13  ;;  %2531 = vmatpush1.bf16.msra.mxu1 %v3461_v14  ;;  %v3559_v13 = vld [vmem:[#allocation7 + $0x20c] ss:$16 sps:$4 sm:$0xff]   ;;  %v268_v14 = vlaneseq }
  0xfb   :  { %2426 = vmatprep.subr.bf16.mxu0 %v3466_v15  ;;  %2532 = vmatprep.subr.bf16.mxu1 %v3469_v16 }
  0xfc   :  { %v3834_v15 = vshrl.u32 %v268_v14, 7  ;;  %v3575_v14 = vld [vmem:[#allocation7 + $0x268] ss:$16 sps:$4 sm:$0xff]  }
  0xfe   :  { %2427 = vmatpush1.bf16.msra.mxu0 %v3464_v17  ;;  %2533 = vmatpush1.bf16.msra.mxu1 %v3467_v18  ;;  %v270_v16 = vsub.s32 0, %v3834_v15  ;;  %v278_v17 = vsub.s32 2, %v3834_v15  ;;  %v266_v18 = vld [vmem:[%s3953_s2] sm:$0xf] }
  0xff   :  { %2428 = vmatprep.subr.bf16.mxu0 %v3472_v19  ;;  %2534 = vmatprep.subr.bf16.mxu1 %v3475_v20  ;;  %v274_v19 = vsub.s32 1, %v3834_v15  ;;  %v282_v20 = vsub.s32 3, %v3834_v15 }
 0x100   :  { %1457 = vmatmul.mubr.bf16.gmra.mrb[4].mxu0 %v3457_v21  ;;  %1616 = vmatmul.mubr.bf16.gmra.mrb[4].mxu1 %v3457_v21  ;;  %v271_v21 = vrot.slane %v266_v18, %v270_v16 }
 0x102   :  { %2429 = vmatpush1.bf16.msra.mxu0 %v3470_v22  ;;  %2535 = vmatpush1.bf16.msra.mxu1 %v3473_v23  ;;  %v279_v22 = vrot.slane %v266_v18, %v278_v17 }
 0x103   :  { %2430 = vmatprep.subr.bf16.mxu0 %v3478_v24  ;;  %2536 = vmatprep.subr.bf16.mxu1 %v3481_v25  ;;  %v275_v25 = vrot.slane %v266_v18, %v274_v19 }
 0x106   :  { %2431 = vmatpush1.bf16.msra.mxu0 %v3476_v26  ;;  %2537 = vmatpush1.bf16.msra.mxu1 %v3479_v27  ;;  %v283_v26 = vrot.slane %v266_v18, %v282_v20  ;;  %v3580_v18 = vld [vmem:[#allocation7 + $0x284] ss:$16 sps:$4 sm:$0xff]  }
 0x107   :  { %2432 = vmatprep.subr.bf16.mxu0 %v3484_v28  ;;  %2538 = vmatprep.subr.bf16.mxu1 %v3487_v29 }
 0x10a   :  { %2433 = vmatpush1.bf16.msra.mxu0 %v3482_v30  ;;  %2539 = vmatpush1.bf16.msra.mxu1 %v3485_v31 }
 0x10b   :  { %2434 = vmatprep.subr.bf16.mxu0 %v3490_v32  ;;  %2540 = vmatprep.subr.bf16.mxu1 %v3493_v33 }
 0x10e   :  { %2435 = vmatpush1.bf16.msra.mxu0 %v3488_v34  ;;  %2541 = vmatpush1.bf16.msra.mxu1 %v3491_v35 }
 0x10f   :  { %2436 = vmatprep.subr.bf16.mxu0 %v3496_v36  ;;  %2542 = vmatprep.subr.bf16.mxu1 %v3499_v37 }
 0x112   :  { %2437 = vmatpush1.bf16.msra.mxu0 %v3494_v38  ;;  %2543 = vmatpush1.bf16.msra.mxu1 %v3497_v39 }
 0x113   :  { %2438 = vmatprep.subr.bf16.mxu0 %v3502_v40  ;;  %2544 = vmatprep.subr.bf16.mxu1 %v3505_v41 }
 0x116   :  { %2439 = vmatpush1.bf16.msra.mxu0 %v3500_v42  ;;  %2545 = vmatpush1.bf16.msra.mxu1 %v3503_v43 }
 0x117   :  { %2440 = vmatprep.subr.bf16.mxu0 %v3508_v44  ;;  %2546 = vmatprep.subr.bf16.mxu1 %v3511_v45  ;;  %v3554_v45 = vld [vmem:[#allocation7 + $0x200] ss:$16 sps:$4 sm:$0xff]  }
 0x11a   :  { %2441 = vmatpush1.bf16.msra.mxu0 %v3506_v46  ;;  %2547 = vmatpush1.bf16.msra.mxu1 %v3509_v47  ;;  %v3557_v46 = vld [vmem:[#allocation7 + $0x208] ss:$16 sps:$4 sm:$0xff]   ;;  %v3562_v47 = vld [vmem:[#allocation7 + $0x224] ss:$16 sps:$4 sm:$0xff]  }
 0x11b   :  { %2442 = vmatprep.subr.bf16.mxu0 %v3514_v48  ;;  %2548 = vmatprep.subr.bf16.mxu1 %v3517_v49  ;;  %v3565_v48 = vld [vmem:[#allocation7 + $0x22c] ss:$16 sps:$4 sm:$0xff]  }
 0x11e   :  { %2443 = vmatpush1.bf16.msra.mxu0 %v3512_v50  ;;  %2549 = vmatpush1.bf16.msra.mxu1 %v3515_v51 }
 0x11f   :  { %2444 = vmatprep.subr.bf16.mxu0 %v3520_v52  ;;  %2550 = vmatprep.subr.bf16.mxu1 %v3523_v53 }
 0x122   :  { %2445 = vmatpush1.bf16.msra.mxu0 %v3518_v54  ;;  %2551 = vmatpush1.bf16.msra.mxu1 %v3521_v55 }
 0x123   :  { %2446 = vmatprep.subr.bf16.mxu0 %v3526_v56  ;;  %2552 = vmatprep.subr.bf16.mxu1 %v3529_v57  ;;  %v3560_v56 = vld [vmem:[#allocation7 + $0x220] ss:$16 sps:$4 sm:$0xff]   ;;  %v3563_v57 = vld [vmem:[#allocation7 + $0x228] ss:$16 sps:$4 sm:$0xff]  }
 0x126   :  { %2447 = vmatpush1.bf16.msra.mxu0 %v3524_v58  ;;  %2553 = vmatpush1.bf16.msra.mxu1 %v3527_v59 }
 0x127   :  { %2448 = vmatprep.subr.bf16.mxu0 %v3532_v60  ;;  %2554 = vmatprep.subr.bf16.mxu1 %v3535_v61 }
 0x12a   :  { %2449 = vmatpush1.bf16.msra.mxu0 %v3530_v62  ;;  %2555 = vmatpush1.bf16.msra.mxu1 %v3533_v63  ;;  %v3568_v63 = vld [vmem:[#allocation7 + $0x244] ss:$16 sps:$4 sm:$0xff]  }
 0x12b   :  { %2450 = vmatprep.subr.bf16.mxu0 %v3538_v0  ;;  %2556 = vmatprep.subr.bf16.mxu1 %v3541_v1  ;;  %v3571_v0 = vld [vmem:[#allocation7 + $0x24c] ss:$16 sps:$4 sm:$0xff]  }
 0x12e   :  { %2451 = vmatpush1.bf16.msra.mxu0 %v3536_v2  ;;  %2557 = vmatpush1.bf16.msra.mxu1 %v3539_v3 }
 0x12f   :  { %2452 = vmatprep.subr.bf16.mxu0 %v3544_v4  ;;  %2558 = vmatprep.subr.bf16.mxu1 %v3547_v5 }
 0x132   :  { %2453 = vmatpush1.bf16.msra.mxu0 %v3542_v6  ;;  %2559 = vmatpush1.bf16.msra.mxu1 %v3545_v7 }
 0x133   :  { %2454 = vmatprep.subr.bf16.mxu0 %v3550_v8  ;;  %2560 = vmatprep.subr.bf16.mxu1 %v3553_v9  ;;  %v3566_v9 = vld [vmem:[#allocation7 + $0x240] ss:$16 sps:$4 sm:$0xff]  }
 0x136   :  { %2455 = vmatpush1.bf16.msra.mxu0 %v3548_v10  ;;  %2561 = vmatpush1.bf16.msra.mxu1 %v3551_v11  ;;  %v3569_v10 = vld [vmem:[#allocation7 + $0x248] ss:$16 sps:$4 sm:$0xff]   ;;  %v3574_v11 = vld [vmem:[#allocation7 + $0x264] ss:$16 sps:$4 sm:$0xff]  }
 0x137   :  { %2477 = vmatprep.subr.bf16.mxu0 %v3556_v12  ;;  %2583 = vmatprep.subr.bf16.mxu1 %v3559_v13  ;;  %v3577_v12 = vld [vmem:[#allocation7 + $0x26c] ss:$16 sps:$4 sm:$0xff]   ;;  %v3572_v13 = vld [vmem:[#allocation7 + $0x260] ss:$16 sps:$4 sm:$0xff]  }
 0x1cb   :  { %v1448_v23 = vpop.f32.mrb[0].mxu0  ;;  %v1607_v24 = vpop.f32.mrb[0].mxu1 }
 0x1cc   :  { %v1450_v27 = vpop.f32.mrb[1].mxu0  ;;  %v1609_v28 = vpop.f32.mrb[1].mxu1  ;;  %v3062_v31 = vadd.f32 %v1448_v23, %v271_v21  ;;  %v3070_v32 = vadd.f32 %v1607_v24, %v279_v22  ;;  %v3581_v23 = vld [vmem:[#allocation7 + $0x288] ss:$16 sps:$4 sm:$0xff]   ;;  %v3586_v24 = vld [vmem:[#allocation7 + $0x2a4] ss:$16 sps:$4 sm:$0xff]  }
 0x1cd   :  { %v1452_v29 = vpop.f32.mrb[2].mxu0  ;;  %v1611_v30 = vpop.f32.mrb[2].mxu1  ;;  %v3063_v37 = vadd.f32 %v1450_v27, %v275_v25  ;;  %v3071_v38 = vadd.f32 %v1609_v28, %v283_v26  ;;  %v3587_v27 = vld [vmem:[#allocation7 + $0x2a8] ss:$16 sps:$4 sm:$0xff]   ;;  %v3592_v28 = vld [vmem:[#allocation7 + $0x2c4] ss:$16 sps:$4 sm:$0xff]  }
 0x1ce   :  { %v3064_v33 = vadd.f32 %v1452_v29, %v271_v21  ;;  %v3072_v34 = vadd.f32 %v1611_v30, %v279_v22  ;;  %v1454_v35 = vpop.f32.mrb[3].mxu0  ;;  %v1613_v36 = vpop.f32.mrb[3].mxu1  ;;  %v3595_v29 = vld [vmem:[#allocation7 + $0x2cc] ss:$16 sps:$4 sm:$0xff]   ;;  %v3590_v30 = vld [vmem:[#allocation7 + $0x2c0] ss:$16 sps:$4 sm:$0xff]  }
 0x1cf   :  { %v3065_v39 = vadd.f32 %v1454_v35, %v275_v25  ;;  %v3073_v40 = vadd.f32 %v1613_v36, %v283_v26  ;;  %v3599_v35 = vld [vmem:[#allocation7 + $0x2e8] ss:$16 sps:$4 sm:$0xff]   ;;  %v3604_v36 = vld [vmem:[#allocation7 + $0x304] ss:$16 sps:$4 sm:$0xff]  }
 0x1d0   :  { %v1626_v41 = vpack.c.bf16 %v3064_v33, %v3062_v31  ;;  %v3851_v42 = vpack.c.bf16 %v3072_v34, %v3070_v32  ;;  %v3593_v31 = vld [vmem:[#allocation7 + $0x2c8] ss:$16 sps:$4 sm:$0xff]   ;;  %v3598_v32 = vld [vmem:[#allocation7 + $0x2e4] ss:$16 sps:$4 sm:$0xff]   ;;  %v3601_v33 = vld [vmem:[#allocation7 + $0x2ec] ss:$16 sps:$4 sm:$0xff]  }
 0x1d1   :  { %v1627_v43 = vpack.c.bf16 %v3065_v39, %v3063_v37  ;;  %v1629_v44 = vpack.c.bf16 %v3073_v40, %v3071_v38  ;;  %v3596_v34 = vld [vmem:[#allocation7 + $0x2e0] ss:$16 sps:$4 sm:$0xff]   ;;  %v3607_v37 = vld [vmem:[#allocation7 + $0x30c] ss:$16 sps:$4 sm:$0xff]   ;;  %v3605_v39 = vld [vmem:[#allocation7 + $0x308] ss:$16 sps:$4 sm:$0xff]  }
 0x1d2   :  { %v3602_v38 = vld [vmem:[#allocation7 + $0x300] ss:$16 sps:$4 sm:$0xff]   ;;  %v3610_v40 = vld [vmem:[#allocation7 + $0x324] ss:$16 sps:$4 sm:$0xff]  }
 0x1d3   :  { %v1458_v49 = vpop.f32.mrb[4].mxu0  ;;  %v1617_v50 = vpop.f32.mrb[4].mxu1  ;;  %2456 = vmatprep.mubr.bf16.mxu0 %v1627_v43  ;;  %2562 = vmatprep.mubr.bf16.mxu1 %v1627_v43  ;;  %v3608_v43 = vld [vmem:[#allocation7 + $0x320] ss:$16 sps:$4 sm:$0xff]  }
 0x1d4   :  { %v1460_v51 = vpop.f32.mrb[5].mxu0  ;;  %v1619_v52 = vpop.f32.mrb[5].mxu1  ;;  %2457 = vmatmul.mubr.bf16.vlgmr.msra.gmra.mrb[8].mxu0 %v1626_v41  ;;  %2563 = vmatmul.mubr.bf16.vlgmr.msra.gmra.mrb[8].mxu1 %v1626_v41  ;;  %v3066_v53 = vadd.f32 %v1458_v49, %v271_v21  ;;  %v3074_v58 = vadd.f32 %v1617_v50, %v279_v22  ;;  %v3613_v41 = vld [vmem:[#allocation7 + $0x32c] ss:$16 sps:$4 sm:$0xff]   ;;  %v3622_v49 = vld [vmem:[#allocation7 + $0x364] ss:$16 sps:$4 sm:$0xff]  }
 0x1d5   :  { %2478 = vmatpush1.bf16.msra.mxu0 %v3554_v45  ;;  %2584 = vmatpush1.bf16.msra.mxu1 %v3557_v46  ;;  %v1462_v54 = vpop.f32.mrb[6].mxu0  ;;  %v1621_v55 = vpop.f32.mrb[6].mxu1  ;;  %v3067_v1 = vadd.f32 %v1460_v51, %v275_v25  ;;  %v3075_v2 = vadd.f32 %v1619_v52, %v283_v26  ;;  %v3616_v45 = vld [vmem:[#allocation7 + $0x344] ss:$16 sps:$4 sm:$0xff]   ;;  %v3619_v46 = vld [vmem:[#allocation7 + $0x34c] ss:$16 sps:$4 sm:$0xff]  }
 0x1d6   :  { %v3068_v59 = vadd.f32 %v1462_v54, %v271_v21  ;;  %v3076_v60 = vadd.f32 %v1621_v55, %v279_v22  ;;  %v1464_v61 = vpop.f32.mrb[7].mxu0  ;;  %v1623_v62 = vpop.f32.mrb[7].mxu1  ;;  %2479 = vmatprep.subr.bf16.mxu0 %v3562_v47  ;;  %2585 = vmatprep.subr.bf16.mxu1 %v3565_v48  ;;  %v3583_v21 = vld [vmem:[#allocation7 + $0x28c] ss:$16 sps:$4 sm:$0xff]   ;;  %v3578_v22 = vld [vmem:[#allocation7 + $0x280] ss:$16 sps:$4 sm:$0xff]  }
 0x1d7   :  { %v3069_v3 = vadd.f32 %v1464_v61, %v275_v25  ;;  %v3077_v4 = vadd.f32 %v1623_v62, %v283_v26  ;;  %v3589_v25 = vld [vmem:[#allocation7 + $0x2ac] ss:$16 sps:$4 sm:$0xff]   ;;  %v3584_v26 = vld [vmem:[#allocation7 + $0x2a0] ss:$16 sps:$4 sm:$0xff]   ;;  %v3617_v48 = vld [vmem:[#allocation7 + $0x348] ss:$16 sps:$4 sm:$0xff]  }
 0x1d8   :  { %v1630_v5 = vpack.c.bf16 %v3068_v59, %v3066_v53  ;;  %v3853_v6 = vpack.c.bf16 %v3076_v60, %v3074_v58  ;;  %v3614_v47 = vld [vmem:[#allocation7 + $0x340] ss:$16 sps:$4 sm:$0xff]   ;;  %v3625_v50 = vld [vmem:[#allocation7 + $0x36c] ss:$16 sps:$4 sm:$0xff]   ;;  %v3623_v52 = vld [vmem:[#allocation7 + $0x368] ss:$16 sps:$4 sm:$0xff]  }
 0x1d9   :  { %v1631_v7 = vpack.c.bf16 %v3069_v3, %v3067_v1  ;;  %v3855_v8 = vpack.c.bf16 %v3077_v4, %v3075_v2  ;;  %2480 = vmatpush1.bf16.msra.mxu0 %v3560_v56  ;;  %2586 = vmatpush1.bf16.msra.mxu1 %v3563_v57  ;;  %v3620_v51 = vld [vmem:[#allocation7 + $0x360] ss:$16 sps:$4 sm:$0xff]   ;;  %v3628_v53 = vld [vmem:[#allocation7 + $0x384] ss:$16 sps:$4 sm:$0xff]   ;;  %v3631_v54 = vld [vmem:[#allocation7 + $0x38c] ss:$16 sps:$4 sm:$0xff]  }
 0x1da   :  { %2481 = vmatprep.subr.bf16.mxu0 %v3568_v63  ;;  %2587 = vmatprep.subr.bf16.mxu1 %v3571_v0  ;;  %v3626_v55 = vld [vmem:[#allocation7 + $0x380] ss:$16 sps:$4 sm:$0xff]   ;;  %v3629_v56 = vld [vmem:[#allocation7 + $0x388] ss:$16 sps:$4 sm:$0xff]   ;;  %v3634_v57 = vld [vmem:[#allocation7 + $0x3a4] ss:$16 sps:$4 sm:$0xff]  }
 0x1db   :  { %2466 = vmatprep.mubr.bf16.mxu0 %v1631_v7  ;;  %2572 = vmatprep.mubr.bf16.mxu1 %v1631_v7  ;;  %v3637_v58 = vld [vmem:[#allocation7 + $0x3ac] ss:$16 sps:$4 sm:$0xff]   ;;  %v3632_v59 = vld [vmem:[#allocation7 + $0x3a0] ss:$16 sps:$4 sm:$0xff]   ;;  %v3635_v60 = vld [vmem:[#allocation7 + $0x3a8] ss:$16 sps:$4 sm:$0xff]  }
 0x1dc   :  { %2467 = vmatmul.mubr.bf16.gmra.mrb[12].mxu0 %v1630_v5  ;;  %2573 = vmatmul.mubr.bf16.gmra.mrb[12].mxu1 %v1630_v5  ;;  %v3640_v61 = vld [vmem:[#allocation7 + $0x3c4] ss:$16 sps:$4 sm:$0xff]   ;;  %v3643_v62 = vld [vmem:[#allocation7 + $0x3cc] ss:$16 sps:$4 sm:$0xff]   ;;  %v3638_v63 = vld [vmem:[#allocation7 + $0x3c0] ss:$16 sps:$4 sm:$0xff]  }
 0x1dd   :  { %2482 = vmatpush1.bf16.msra.mxu0 %v3566_v9  ;;  %2588 = vmatpush1.bf16.msra.mxu1 %v3569_v10  ;;  %v3641_v0 = vld [vmem:[#allocation7 + $0x3c8] ss:$16 sps:$4 sm:$0xff]   ;;  %v3646_v1 = vld [vmem:[#allocation7 + $0x3e4] ss:$16 sps:$4 sm:$0xff]   ;;  %v3649_v2 = vld [vmem:[#allocation7 + $0x3ec] ss:$16 sps:$4 sm:$0xff]  }
 0x1de   :  { %2509 = vmatprep.mubr.bf16.mxu0 %v1629_v44  ;;  %2615 = vmatprep.mubr.bf16.mxu1 %v1629_v44  ;;  %v3611_v44 = vld [vmem:[#allocation7 + $0x328] ss:$16 sps:$4 sm:$0xff]   ;;  %v3644_v3 = vld [vmem:[#allocation7 + $0x3e0] ss:$16 sps:$4 sm:$0xff]  }
 0x1df   :  { %2483 = vmatprep.subr.bf16.mxu0 %v3574_v11  ;;  %2589 = vmatprep.subr.bf16.mxu1 %v3577_v12  ;;  %v3647_v4 = vld [vmem:[#allocation7 + $0x3e8] ss:$16 sps:$4 sm:$0xff]   ;;  %v1762_v5 = vld [vmem:[%s3955_s4] sm:$0xf]  ;;  %s3759_s4 = smov [#allocation8]  }
 0x1e0   :  { %v1767_v7 = vrot.slane %v1762_v5, %v270_v16  ;;  %v1775_v9 = vrot.slane %v1762_v5, %v278_v17  ;;  %s2717_s8 = sshll.u32 %s3759_s4, 4  ;;  %s2718_s8 = int_to_ptr.vmem [resolvable:$true] %s2717_s8 }
 0x1e1   :  { %2484 = vmatpush1.bf16.msra.mxu0 %v3572_v13  ;;  %2590 = vmatpush1.bf16.msra.mxu1 %v3575_v14  ;;  %s3724_s9 = scalar_lea.vmem %s2718_s8, 2048  ;;  %p3729_p11 = scmp.lt.s32.totalorder %s2718_s8, %s2718_s8 }
 0x1e2   :  { %2485 = vmatprep.subr.bf16.mxu0 %v3580_v18  ;;  %2591 = vmatprep.subr.bf16.mxu1 %v3583_v21  ;;  %p3725_p10 = scmp.ne.s32.totalorder %s2718_s8, %s3724_s9  ;;  %p3730_p12 = scmp.lt.s32.totalorder %s3724_s9, %s3724_s9 }
 0x1e4   :  { %p3731_p13 = por %p3730_p12, %p3729_p11 }
 0x1e5   :  { %2486 = vmatpush1.bf16.msra.mxu0 %v3578_v22  ;;  %2592 = vmatpush1.bf16.msra.mxu1 %v3581_v23 }
 0x1e6   :  { %2487 = vmatprep.subr.bf16.mxu0 %v3586_v24  ;;  %2593 = vmatprep.subr.bf16.mxu1 %v3589_v25  ;;  %p3732_p0 = pnand %p3731_p13, %p3725_p10 }
 0x1e9   :  { %2488 = vmatpush1.bf16.msra.mxu0 %v3584_v26  ;;  %2594 = vmatpush1.bf16.msra.mxu1 %v3587_v27 }
 0x1ea   :  { %2489 = vmatprep.subr.bf16.mxu0 %v3592_v28  ;;  %2595 = vmatprep.subr.bf16.mxu1 %v3595_v29 }
 0x1ed   :  { %2490 = vmatpush1.bf16.msra.mxu0 %v3590_v30  ;;  %2596 = vmatpush1.bf16.msra.mxu1 %v3593_v31 }
 0x1ee   :  { %2491 = vmatprep.subr.bf16.mxu0 %v3598_v32  ;;  %2597 = vmatprep.subr.bf16.mxu1 %v3601_v33 }
 0x1f1   :  { %2492 = vmatpush1.bf16.msra.mxu0 %v3596_v34  ;;  %2598 = vmatpush1.bf16.msra.mxu1 %v3599_v35 }
 0x1f2   :  { %2493 = vmatprep.subr.bf16.mxu0 %v3604_v36  ;;  %2599 = vmatprep.subr.bf16.mxu1 %v3607_v37 }
 0x1f5   :  { %2494 = vmatpush1.bf16.msra.mxu0 %v3602_v38  ;;  %2600 = vmatpush1.bf16.msra.mxu1 %v3605_v39 }
 0x1f6   :  { %2495 = vmatprep.subr.bf16.mxu0 %v3610_v40  ;;  %2601 = vmatprep.subr.bf16.mxu1 %v3613_v41 }
 0x1f9   :  { %2496 = vmatpush1.bf16.msra.mxu0 %v3608_v43  ;;  %2602 = vmatpush1.bf16.msra.mxu1 %v3611_v44 }
 0x1fa   :  { %2497 = vmatprep.subr.bf16.mxu0 %v3616_v45  ;;  %2603 = vmatprep.subr.bf16.mxu1 %v3619_v46 }
 0x1fd   :  { %2498 = vmatpush1.bf16.msra.mxu0 %v3614_v47  ;;  %2604 = vmatpush1.bf16.msra.mxu1 %v3617_v48 }
 0x1fe   :  { %2499 = vmatprep.subr.bf16.mxu0 %v3622_v49  ;;  %2605 = vmatprep.subr.bf16.mxu1 %v3625_v50 }
 0x201   :  { %2500 = vmatpush1.bf16.msra.mxu0 %v3620_v51  ;;  %2606 = vmatpush1.bf16.msra.mxu1 %v3623_v52 }
 0x202   :  { %2501 = vmatprep.subr.bf16.mxu0 %v3628_v53  ;;  %2607 = vmatprep.subr.bf16.mxu1 %v3631_v54 }
 0x205   :  { %2502 = vmatpush1.bf16.msra.mxu0 %v3626_v55  ;;  %2608 = vmatpush1.bf16.msra.mxu1 %v3629_v56 }
 0x206   :  { %2503 = vmatprep.subr.bf16.mxu0 %v3634_v57  ;;  %2609 = vmatprep.subr.bf16.mxu1 %v3637_v58 }
 0x209   :  { %2504 = vmatpush1.bf16.msra.mxu0 %v3632_v59  ;;  %2610 = vmatpush1.bf16.msra.mxu1 %v3635_v60 }
 0x20a   :  { %2505 = vmatprep.subr.bf16.mxu0 %v3640_v61  ;;  %2611 = vmatprep.subr.bf16.mxu1 %v3643_v62 }
 0x20d   :  { %2506 = vmatpush1.bf16.msra.mxu0 %v3638_v63  ;;  %2612 = vmatpush1.bf16.msra.mxu1 %v3641_v0 }
 0x20e   :  { %2507 = vmatprep.subr.bf16.mxu0 %v3646_v1  ;;  %2613 = vmatprep.subr.bf16.mxu1 %v3649_v2 }
 0x211   :  { %2508 = vmatpush1.bf16.msra.mxu0 %v3644_v3  ;;  %2614 = vmatpush1.bf16.msra.mxu1 %v3647_v4 }
 0x214   :  { %2510 = vmatmul.mubr.bf16.vlgmr.msra.gmra.mrb[8].mxu0 %v3851_v42  ;;  %2616 = vmatmul.mubr.bf16.vlgmr.msra.gmra.mrb[8].mxu1 %v3851_v42  ;;  %v1771_v42 = vrot.slane %v1762_v5, %v274_v19 }
 0x215   :  { %2519 = vmatprep.mubr.bf16.mxu0 %v3855_v8  ;;  %2625 = vmatprep.mubr.bf16.mxu1 %v3855_v8  ;;  %v1779_v8 = vrot.slane %v1762_v5, %v282_v20 }
 0x21c   :  { %2520 = vmatmul.mubr.bf16.gmra.mrb[12].mxu0 %v3853_v6  ;;  %2626 = vmatmul.mubr.bf16.gmra.mrb[12].mxu1 %v3853_v6 }
 0x2e7   :  { %v2511_v10 = vpop.f32.mrb[8].mxu0  ;;  %v2617_v11 = vpop.f32.mrb[8].mxu1 }
 0x2e8   :  { %v3874_v12 = vadd.f32 %v2511_v10, %v1767_v7  ;;  %v2513_v6 = vpop.f32.mrb[9].mxu0  ;;  %v2619_v13 = vpop.f32.mrb[9].mxu1  ;;  %v3876_v14 = vadd.f32 %v2617_v11, %v1775_v9 }
 0x2e9   :  { %v3878_v18 = vadd.f32 %v2513_v6, %v1771_v42  ;;  %v2515_v16 = vpop.f32.mrb[10].mxu0  ;;  %v2621_v21 = vpop.f32.mrb[10].mxu1  ;;  %v3886_v20 = vadd.f32 %v2619_v13, %v1779_v8 }
 0x2ea   :  { %v2636_v17 = vmul.f32 %v3874_v12, %v3874_v12  ;;  %v3882_v22 = vadd.f32 %v2515_v16, %v1767_v7  ;;  %v2517_v19 = vpop.f32.mrb[11].mxu0  ;;  %v2623_v23 = vpop.f32.mrb[11].mxu1  ;;  %v3888_v24 = vadd.f32 %v2621_v21, %v1775_v9  ;;  %v2638_v27 = vmul.f32 %v3876_v14, %v3876_v14 }
 0x2eb   :  { %v2637_v15 = vmul.f32 %v3878_v18, %v3878_v18  ;;  %v3890_v25 = vadd.f32 %v2517_v19, %v1771_v42  ;;  %v3898_v30 = vadd.f32 %v2623_v23, %v1779_v8  ;;  %v2639_v35 = vmul.f32 %v3886_v20, %v3886_v20 }
 0x2ec   :  { %v2640_v26 = vmul.f32 %v3882_v22, %v3882_v22  ;;  %v2642_v31 = vmul.f32 %v3888_v24, %v3888_v24 }
 0x2ed   :  { %v2641_v28 = vmul.f32 %v3890_v25, %v3890_v25  ;;  %v2652_v29 = vadd.f32 %v2637_v15, %v2636_v17  ;;  %v2643_v47 = vmul.f32 %v3898_v30, %v3898_v30 }
 0x2ef   :  { %v2657_v32 = vadd.f32 %v2641_v28, %v2640_v26  ;;  %v2521_v33 = vpop.f32.mrb[12].mxu0  ;;  %v2627_v34 = vpop.f32.mrb[12].mxu1  ;;  %v2653_v36 = vadd.f32 %v2652_v29, %v2638_v27 }
 0x2f0   :  { %v3904_v37 = vadd.f32 %v2521_v33, %v1767_v7  ;;  %v2523_v38 = vpop.f32.mrb[13].mxu0  ;;  %v2629_v39 = vpop.f32.mrb[13].mxu1  ;;  %v3906_v40 = vadd.f32 %v2627_v34, %v1775_v9 }
 0x2f1   :  { %v3908_v41 = vadd.f32 %v2523_v38, %v1771_v42  ;;  %v2525_v43 = vpop.f32.mrb[14].mxu0  ;;  %v2631_v44 = vpop.f32.mrb[14].mxu1  ;;  %v2654_v45 = vadd.f32 %v2653_v36, %v2639_v35  ;;  %v2658_v46 = vadd.f32 %v2657_v32, %v2642_v31  ;;  %v3091_v53 = vadd.f32 %v2629_v39, %v1779_v8 }
 0x2f2   :  { %v2644_v48 = vmul.f32 %v3904_v37, %v3904_v37  ;;  %v3914_v49 = vadd.f32 %v2525_v43, %v1767_v7  ;;  %v2527_v50 = vpop.f32.mrb[15].mxu0  ;;  %v2633_v51 = vpop.f32.mrb[15].mxu1  ;;  %v3918_v54 = vadd.f32 %v2631_v44, %v1775_v9  ;;  %v2646_v57 = vmul.f32 %v3906_v40, %v3906_v40 }
 0x2f3   :  { %v2645_v52 = vmul.f32 %v3908_v41, %v3908_v41  ;;  %v3085_v55 = vadd.f32 %v2527_v50, %v1771_v42  ;;  %2655 = vadd.xlane.f32.xlu0 %v2654_v45  ;;  %v2659_v59 = vadd.f32 %v2658_v46, %v2643_v47  ;;  %v3093_v61 = vadd.f32 %v2633_v51, %v1779_v8 }
 0x2f4   :  { %v2648_v56 = vmul.f32 %v3914_v49, %v3914_v49  ;;  %v2650_v62 = vmul.f32 %v3918_v54, %v3918_v54  ;;  %v2647_v0 = vmul.f32 %v3091_v53, %v3091_v53 }
 0x2f5   :  { %v2649_v58 = vmul.f32 %v3085_v55, %v3085_v55  ;;  %v2662_v60 = vadd.f32 %v2645_v52, %v2644_v48  ;;  %v2651_v4 = vmul.f32 %v3093_v61, %v3093_v61 }
 0x2f7   :  { %v2667_v63 = vadd.f32 %v2649_v58, %v2648_v56  ;;  %2660 = vadd.xlane.f32.xlu0 %v2659_v59  ;;  %v2663_v1 = vadd.f32 %v2662_v60, %v2646_v57 }
 0x2f9   :  { %v2664_v2 = vadd.f32 %v2663_v1, %v2647_v0  ;;  %v2668_v3 = vadd.f32 %v2667_v63, %v2650_v62 }
 0x2fb   :  { %2665 = vadd.xlane.f32.xlu1 %v2664_v2  ;;  %v2669_v5 = vadd.f32 %v2668_v3, %v2651_v4 }
 0x2ff   :  { %2670 = vadd.xlane.f32.xlu1 %v2669_v5 }
 0x380   :  { %v2656_v7 = vpop.xlane.xlu0 %2655 }
 0x381   :  { %v2672_v9 = vadd.f32 1e-12, %v2656_v7 }
 0x383   :  { %3650 = vrsqrt.f32 %v2672_v9 }
 0x384   :  { %v2661_v42 = vpop.xlane.xlu0 %2660 }
 0x385   :  { %v2673_v10 = vadd.f32 1e-12, %v2661_v42 }
 0x387   :  { %3652 = vrsqrt.f32 %v2673_v10 }
 0x388   :  { %v2666_v11 = vpop.xlane.xlu1 %2665 }
 0x389   :  { %v2674_v8 = vadd.f32 1e-12, %v2666_v11 }
 0x38b   :  { %3654 = vrsqrt.f32 %v2674_v8 }
 0x38c   :  { %v2671_v6 = vpop.xlane.xlu1 %2670 }
 0x38d   :  { %v3651_v13 = vpop.eup %3650  ;;  %v2675_v16 = vadd.f32 1e-12, %v2671_v6 }
 0x38e   :  { %v2680_v21 = vmul.f32 %v3651_v13, %v3874_v12  ;;  %v2681_v17 = vmul.f32 %v3651_v13, %v3878_v18  ;;  %v2682_v19 = vmul.f32 %v3651_v13, %v3876_v14  ;;  %v2683_v23 = vmul.f32 %v3651_v13, %v3886_v20 }
 0x38f   :  { %3656 = vrsqrt.f32 %v2675_v16 }
 0x390   :  { %2696 = vst [vmem:[#allocation8] sm:$0xff] %v2680_v21  ;;  %2697 = vst [vmem:[#allocation8 + $0x8] sm:$0xff] %v2681_v17 }
 0x391   :  { %2698 = vst [vmem:[#allocation8 + $0x10] sm:$0xff] %v2682_v19  ;;  %2699 = vst [vmem:[#allocation8 + $0x18] sm:$0xff] %v2683_v23  ;;  %v3653_v15 = vpop.eup %3652 }
 0x392   :  { %v2684_v26 = vmul.f32 %v3653_v15, %v3882_v22  ;;  %v2685_v27 = vmul.f32 %v3653_v15, %v3890_v25  ;;  %v2686_v28 = vmul.f32 %v3653_v15, %v3888_v24  ;;  %v2687_v12 = vmul.f32 %v3653_v15, %v3898_v30 }
 0x394   :  { %2700 = vst [vmem:[#allocation8 + $0x20] sm:$0xff] %v2684_v26  ;;  %2701 = vst [vmem:[#allocation8 + $0x28] sm:$0xff] %v2685_v27 }
 0x395   :  { %2702 = vst [vmem:[#allocation8 + $0x30] sm:$0xff] %v2686_v28  ;;  %2703 = vst [vmem:[#allocation8 + $0x38] sm:$0xff] %v2687_v12  ;;  %v3655_v14 = vpop.eup %3654 }
 0x396   :  { %v2688_v18 = vmul.f32 %v3655_v14, %v3904_v37  ;;  %v2689_v20 = vmul.f32 %v3655_v14, %v3908_v41  ;;  %v2690_v29 = vmul.f32 %v3655_v14, %v3906_v40  ;;  %v2691_v31 = vmul.f32 %v3655_v14, %v3091_v53 }
 0x398   :  { %2704 = vst [vmem:[#allocation8 + $0x40] sm:$0xff] %v2688_v18  ;;  %2705 = vst [vmem:[#allocation8 + $0x48] sm:$0xff] %v2689_v20 }
 0x399   :  { %2706 = vst [vmem:[#allocation8 + $0x50] sm:$0xff] %v2690_v29  ;;  %2707 = vst [vmem:[#allocation8 + $0x58] sm:$0xff] %v2691_v31  ;;  %v3657_v22 = vpop.eup %3656 }
 0x39a   :  { %v2692_v24 = vmul.f32 %v3657_v22, %v3914_v49  ;;  %v2693_v25 = vmul.f32 %v3657_v22, %v3085_v55  ;;  %v2694_v30 = vmul.f32 %v3657_v22, %v3918_v54  ;;  %v2695_v32 = vmul.f32 %v3657_v22, %v3093_v61 }
 0x39c   :  { %2708 = vst [vmem:[#allocation8 + $0x60] sm:$0xff] %v2692_v24  ;;  %2709 = vst [vmem:[#allocation8 + $0x68] sm:$0xff] %v2693_v25 }
 0x39d   :  { %2710 = vst [vmem:[#allocation8 + $0x70] sm:$0xff] %v2694_v30  ;;  %2711 = vst [vmem:[#allocation8 + $0x78] sm:$0xff] %v2695_v32 }
 0x39e   :  { %3735 = shalt.err (!%p3732_p0)
}
 0x39f   :  { %s3736_s12 = scalar_lea.hbm %s3956_s5, 2048 }
 0x3a0   :  { %p3737_p1 = scmp.ne.s32.totalorder %s3956_s5, %s3736_s12  ;;  %p3740_p2 = scmp.lt.u32.totalorder %s3736_s12, %s3956_s5 }
 0x3a2   :  { %p3742_p3 = pnand %p3740_p2, %p3737_p1 }
 0x3a4   :  { %3745 = shalt.err (!%p3742_p3)
}
 0x3a5   :  { %s3760_s1 = smov 512   ;;  %s3761_s17 = smov 32  }
 0x3a6   :  { %2723 = dma.vmem_to_hbm [thread:$0]  %s2718_s8, 2048, %s3956_s5, [#allocation4], %s3760_s1, %s3760_s1, %s3761_s17  }
 0x3a7   :  { %3750 = dma.done.wait [#allocation4], 2048  }
 0x3a8   :  { %3751 = vsyncadd [#allocation4], 4294965248 }
 0x3a9   :  { %2727 = vsyncpa [#allocation3], 1 }
 0x3aa   :  { %2728 = vsyncpa [#allocation6], 1 }
 0x3ab   :  { %2729 = vsyncpa [#allocation4], 1 }

</bundles_post_ra>
